<compile_context>
chip_gen: v6e
topology: v6e:2x2x1
jax: 0.10.0
libtpu: 0.0.40
codegen_flags: <defaults>
</compile_context>

<pallas_src>
import functools

import jax
import jax.numpy as jnp
from jax import lax
from jax.experimental import pallas as pl
from jax.experimental.pallas import tpu as pltpu
import numpy as np


def _round_up(x, m):
    return ((x + m - 1) // m) * m


# ----------------------------------------------------------------------------
# Pallas kernel: one grid step == Tc GRU time steps for one batch block.
# Inputs (pre-padded):
#   x_ref     : (Tc, Bb, Ip)   bf16  raw observations for this chunk
#   h0_ref    : (Bb, Hp)       f32   initial hidden state
#   wih_t_ref : (Ip, 3*Hp)     bf16  W_ih^T, gate-blocked columns [r | z | n]
#   whh_t_ref : (Hp, 3*Hp)     bf16  W_hh^T, gate-blocked columns [r | z | n]
#   bias_ref  : (1, 3*Hp)      f32   b_ih + [b_hr, b_hz, 0]  (folded)
#   bhn_ref   : (1, Hp)        f32   b_hn (only bias that rides the h path)
# Output:
#   out_ref   : (Tc, Bb, Hp)   caller dtype
# Scratch:
#   h_scratch : (Bb, Hp)       f32   hidden state carried across time chunks
#   gi_scratch: (Tc, Bb, 3*Hp) f32   per-chunk input projection (VMEM only)
# ----------------------------------------------------------------------------
def _gru_kernel(x_ref, h0_ref, wih_t_ref, whh_t_ref, bias_ref, bhn_ref,
                out_ref, h_scratch, gi_scratch, *, unroll):
    @pl.when(pl.program_id(1) == 0)
    def _():
        h_scratch[...] = h0_ref[...]

    tc, bb, hp = out_ref.shape
    ip = x_ref.shape[-1]

    # Fused input projection for the whole chunk: one big bf16 MXU matmul with
    # f32 accumulation, biases folded in.  Lives only in VMEM (never HBM).
    x_flat = x_ref[...].reshape(tc * bb, ip)
    gi = jnp.dot(x_flat, wih_t_ref[...], preferred_element_type=jnp.float32)
    gi_scratch[...] = (gi + bias_ref[...]).reshape(tc, bb, 3 * hp)

    w_hh_t = whh_t_ref[...]                              # bf16, chunk-resident
    b_hn = jnp.broadcast_to(bhn_ref[...], (bb, hp))      # hoisted broadcast

    def step(i, h):
        gi_t = gi_scratch[i]                             # (Bb, 3Hp) f32
        gh = jnp.dot(h.astype(jnp.bfloat16), w_hh_t,
                     preferred_element_type=jnp.float32)  # (Bb, 3Hp) f32
        # r and z with one sigmoid over the contiguous first 2*Hp lanes.
        rz = jax.nn.sigmoid(gi_t[:, :2 * hp] + gh[:, :2 * hp])
        r = rz[:, :hp]
        z = rz[:, hp:]
        n = jnp.tanh(gi_t[:, 2 * hp:] + r * (gh[:, 2 * hp:] + b_hn))
        h_new = (1.0 - z) * n + z * h
        out_ref[i] = h_new.astype(out_ref.dtype)
        return h_new

    h_scratch[...] = lax.fori_loop(0, tc, step, h_scratch[...], unroll=unroll)


# ----------------------------------------------------------------------------
# Wrapper: reproduces GRUEncoder.forward semantics.
# ----------------------------------------------------------------------------
def gru_encoder_forward(observation, hidden_state, params, *,
                        time_block=64, batch_block=None):
    """observation: (T,B,I) or (B,I); hidden_state: (1,B,H)."""
    without_time = observation.ndim == 2
    if without_time:
        observation = observation[None]                  # unsqueeze(0)

    T, B, I = observation.shape
    H = hidden_state.shape[-1]
    out_dtype = observation.dtype
    out_bytes = np.dtype(out_dtype).itemsize
    f32 = jnp.float32

    w_ih = params["w_ih"].astype(f32)                    # (3H, I)
    w_hh = params["w_hh"].astype(f32)                    # (3H, H)
    b_ih = params["b_ih"].astype(f32)                    # (3H,)
    b_hh = params["b_hh"].astype(f32)                    # (3H,)

    # ---- TPU-friendly padded sizes: lanes mult of 128, sublanes mult of 8.
    Hp = _round_up(H, 128)
    Ip = _round_up(I, 128)
    Bb = batch_block if batch_block is not None else min(_round_up(B, 8), 128)
    Bb = max(8, (Bb // 8) * 8)
    Bp = _round_up(B, Bb)

    # ---- Time chunk: as large as the VMEM budget allows (mult of 8). ----
    Tc = max(1, min(time_block, T))
    if Tc > 8:
        Tc = (Tc // 8) * 8

    def vmem_est(tc):
        x_blk = 2 * tc * Bb * Ip * 2                      # bf16, double-buffered
        o_blk = 2 * tc * Bb * Hp * out_bytes              # double-buffered
        wgt = 2 * (Ip * 3 * Hp + Hp * 3 * Hp) * 2         # bf16 weights, x2 buf
        small = 2 * (Bb * Hp * 4 + 4 * Hp * 4)            # h0 + biases
        scr = tc * Bb * 3 * Hp * 4 + Bb * Hp * 4          # gi + h scratch (f32)
        return x_blk + o_blk + wgt + small + scr

    VMEM_BUDGET = 28 * 1024 * 1024
    while Tc > 8 and vmem_est(Tc) > VMEM_BUDGET:
        Tc = max(8, ((Tc // 2) // 8) * 8)
    Tp = _round_up(T, Tc)
    unroll = Tc if Tc <= 8 else 8
    vmem_limit = int(min(max(2 * vmem_est(Tc), 32 * 1024 * 1024),
                         48 * 1024 * 1024))

    # ---- Weights: gate-blocked transposes, bf16 operands. ----
    w_ih_t = jnp.pad(w_ih.reshape(3, H, I), ((0, 0), (0, Hp - H), (0, Ip - I)))
    w_ih_t = jnp.transpose(w_ih_t, (2, 0, 1)).reshape(Ip, 3 * Hp)
    w_ih_t = w_ih_t.astype(jnp.bfloat16)

    w_hh_t = jnp.pad(w_hh.reshape(3, H, H), ((0, 0), (0, Hp - H), (0, Hp - H)))
    w_hh_t = jnp.transpose(w_hh_t, (2, 0, 1)).reshape(Hp, 3 * Hp)
    w_hh_t = w_hh_t.astype(jnp.bfloat16)

    # Fold b_ih plus the r/z parts of b_hh into the input projection; only
    # b_hn must stay on the h path (it is scaled by the reset gate).
    bias_fold = b_ih + jnp.concatenate([b_hh[:2 * H], jnp.zeros((H,), f32)])
    bias_fold = jnp.pad(bias_fold.reshape(3, H), ((0, 0), (0, Hp - H)))
    bias_fold = bias_fold.reshape(1, 3 * Hp)
    b_hn = jnp.pad(b_hh[2 * H:], (0, Hp - H)).reshape(1, Hp)

    # ---- Streams: pad only when needed (skips extra HBM copies). ----
    h0 = hidden_state[0].astype(f32)
    if (Bp, Hp) != (B, H):
        h0 = jnp.pad(h0, ((0, Bp - B), (0, Hp - H)))

    x = observation.astype(jnp.bfloat16)
    if (Tp, Bp, Ip) != (T, B, I):
        x = jnp.pad(x, ((0, Tp - T), (0, Bp - B), (0, Ip - I)))

    n_b = Bp // Bb
    n_t = Tp // Tc

    grid_spec = pltpu.PrefetchScalarGridSpec(
        num_scalar_prefetch=0,
        grid=(n_b, n_t),                       # batch (parallel), time (sequential)
        in_specs=[
            pl.BlockSpec((Tc, Bb, Ip), lambda b, t: (t, b, 0)),     # x chunk
            pl.BlockSpec((Bb, Hp), lambda b, t: (b, 0)),            # h0
            pl.BlockSpec((Ip, 3 * Hp), lambda b, t: (0, 0)),        # W_ih^T
            pl.BlockSpec((Hp, 3 * Hp), lambda b, t: (0, 0)),        # W_hh^T
            pl.BlockSpec((1, 3 * Hp), lambda b, t: (0, 0)),         # folded bias
            pl.BlockSpec((1, Hp), lambda b, t: (0, 0)),             # b_hn
        ],
        out_specs=pl.BlockSpec((Tc, Bb, Hp), lambda b, t: (t, b, 0)),
        scratch_shapes=[
            pltpu.VMEM((Bb, Hp), jnp.float32),            # carried hidden state
            pltpu.VMEM((Tc, Bb, 3 * Hp), jnp.float32),    # per-chunk gi
        ],
    )

    out_p = pl.pallas_call(
        functools.partial(_gru_kernel, unroll=unroll),
        out_shape=jax.ShapeDtypeStruct((Tp, Bp, Hp), out_dtype),
        grid_spec=grid_spec,
        compiler_params=pltpu.CompilerParams(
            dimension_semantics=("parallel", "arbitrary"),
            vmem_limit_bytes=vmem_limit,
        ),
    )(x, h0, w_ih_t, w_hh_t, bias_fold, b_hn)

    gru_out = out_p
    if (Tp, Bp, Hp) != (T, B, H):
        gru_out = gru_out[:T, :B, :H]                     # unpad (only if needed)
    h_n = gru_out[T - 1][None]                            # (1, B, H) == h_T
    if without_time:
        gru_out = gru_out[0]                              # squeeze(0)
    return gru_out, h_n


# ----------------------------------------------------------------------------
# Deterministic parameter init (mirrors the module's __init__):
#   weights -> orthogonal (gain 1), biases -> 0.
# ----------------------------------------------------------------------------
def _orthogonal(key, shape, dtype=jnp.float32):
    rows, cols = shape
    flat = jax.random.normal(key, (max(rows, cols), min(rows, cols)), dtype)
    q, r = jnp.linalg.qr(flat)
    q = q * jnp.sign(jnp.diag(r))
    if rows < cols:
        q = q.T
    return q[:rows, :cols].astype(dtype)


def make_gru_params(key, input_size, hidden_size):
    k1, k2 = jax.random.split(key)
    return {
        "w_ih": _orthogonal(k1, (3 * hidden_size, input_size)),
        "w_hh": _orthogonal(k2, (3 * hidden_size, hidden_size)),
        "b_ih": jnp.zeros((3 * hidden_size,), jnp.float32),
        "b_hh": jnp.zeros((3 * hidden_size,), jnp.float32),
    }


# TODO(synk): GRUEncoder.reset_memory_by_ids is a trivial host-side index-zeroing
# op; it is not part of the forward pass and is not implemented as a kernel.


# ----------------------------------------------------------------------------
# Pure-JAX f32 reference (for a silent correctness check).
# ----------------------------------------------------------------------------
def gru_reference(x, h0, params):
    w_ih, w_hh = params["w_ih"], params["w_hh"]
    b_ih, b_hh = params["b_ih"], params["b_hh"]
    H = h0.shape[-1]

    def step(h, x_t):
        gi = jnp.dot(x_t, w_ih.T, precision=lax.Precision.HIGHEST) + b_ih
        gh = jnp.dot(h, w_hh.T, precision=lax.Precision.HIGHEST) + b_hh
        r = jax.nn.sigmoid(gi[:, :H] + gh[:, :H])
        z = jax.nn.sigmoid(gi[:, H:2 * H] + gh[:, H:2 * H])
        n = jnp.tanh(gi[:, 2 * H:] + r * gh[:, 2 * H:])
        h_new = (1.0 - z) * n + z * h
        return h_new, h_new

    h_last, outs = lax.scan(step, h0[0], x)
    return outs, h_last[None]


if __name__ == "__main__":
    # bf16 streamed operands -> loosened tolerance vs the f32 reference.
    RTOL = ATOL = 5e-2

    key = jax.random.PRNGKey(0)
    k_obs, k_h, k_p, k_b1, k_b2, k_obs2, k_h2 = jax.random.split(key, 7)

    # --- Case 1: module-default init (zero biases), small shapes. ---
    T, B, I, H = 8, 4, 16, 32
    observation = jax.random.normal(k_obs, (T, B, I), jnp.float32)
    hidden_state = jax.random.normal(k_h, (1, B, H), jnp.float32)
    params = make_gru_params(k_p, I, H)

    fwd = jax.jit(functools.partial(gru_encoder_forward, params=params))
    gru_out, h_n = fwd(observation, hidden_state)
    jax.block_until_ready((gru_out, h_n))

    ref_out, ref_h = gru_reference(observation, hidden_state, params)
    np.testing.assert_allclose(np.asarray(gru_out), np.asarray(ref_out),
                               rtol=RTOL, atol=ATOL)
    np.testing.assert_allclose(np.asarray(h_n), np.asarray(ref_h),
                               rtol=RTOL, atol=ATOL)

    # --- Case 2: non-zero biases + non-aligned T/B (exercises bias fold,
    #     multi-chunk time carry, batch/time padding). ---
    T2, B2 = 20, 12
    params2 = dict(params)
    params2["b_ih"] = 0.3 * jax.random.normal(k_b1, (3 * H,), jnp.float32)
    params2["b_hh"] = 0.3 * jax.random.normal(k_b2, (3 * H,), jnp.float32)
    obs2 = jax.random.normal(k_obs2, (T2, B2, I), jnp.float32)
    hid2 = jax.random.normal(k_h2, (1, B2, H), jnp.float32)

    fwd2 = jax.jit(functools.partial(gru_encoder_forward, params=params2))
    out2, hn2 = fwd2(obs2, hid2)
    jax.block_until_ready((out2, hn2))
    ref_out2, ref_h2 = gru_reference(obs2, hid2, params2)
    np.testing.assert_allclose(np.asarray(out2), np.asarray(ref_out2),
                               rtol=RTOL, atol=ATOL)
    np.testing.assert_allclose(np.asarray(hn2), np.asarray(ref_h2),
                               rtol=RTOL, atol=ATOL)

    # --- Case 3: the 2-D ("without time") path of forward(). ---
    out2d, h2d = fwd(observation[0], hidden_state)
    jax.block_until_ready((out2d, h2d))
    assert out2d.shape == (B, H) and h2d.shape == (1, B, H)
    ref1, _ = gru_reference(observation[:1], hidden_state, params)
    np.testing.assert_allclose(np.asarray(out2d), np.asarray(ref1[0]),
                               rtol=RTOL, atol=ATOL)

    print("KERNEL_OK")
</pallas_src>

<mosaic_0001>
module attributes {stable_mosaic.version = 11 : i64} {
  func.func @_gru_kernel(%arg0: i32, %arg1: i32, %arg2: memref<8x8x128xbf16, #tpu.memory_space<vmem>>, %arg3: memref<8x128xf32, #tpu.memory_space<vmem>>, %arg4: memref<128x384xbf16, #tpu.memory_space<vmem>>, %arg5: memref<128x384xbf16, #tpu.memory_space<vmem>>, %arg6: memref<1x384xf32, #tpu.memory_space<vmem>>, %arg7: memref<1x128xf32, #tpu.memory_space<vmem>>, %arg8: memref<8x8x128xf32, #tpu.memory_space<vmem>>, %arg9: memref<8x128xf32, #tpu.memory_space<vmem>>, %arg10: memref<8x8x384xf32, #tpu.memory_space<vmem>>) attributes {dimension_semantics = [#tpu.dimension_semantics<parallel>, #tpu.dimension_semantics<arbitrary>], iteration_bounds = array<i64: 1, 1>, scalar_prefetch = 0 : i64, scratch_operands = 2 : i64, tpu.core_type = #tpu.core_type<tc>, window_params = [{transform_indices = @transform_0, window_bounds = array<i64: 8, 8, 128>}, {transform_indices = @transform_1, window_bounds = array<i64: 8, 128>}, {pipeline_mode = #tpu.pipeline_mode<synchronous>, transform_indices = @transform_2, window_bounds = array<i64: 128, 384>}, {pipeline_mode = #tpu.pipeline_mode<synchronous>, transform_indices = @transform_3, window_bounds = array<i64: 128, 384>}, {pipeline_mode = #tpu.pipeline_mode<synchronous>, transform_indices = @transform_4, window_bounds = array<i64: 1, 384>}, {pipeline_mode = #tpu.pipeline_mode<synchronous>, transform_indices = @transform_5, window_bounds = array<i64: 1, 128>}, {transform_indices = @transform_6, window_bounds = array<i64: 8, 8, 128>}]} {
    %c0_i32 = arith.constant 0 : i32
    %0 = arith.cmpi eq, %arg1, %c0_i32 : i32
    %1 = arith.extui %0 : i1 to i32
    %c0_i32_0 = arith.constant 0 : i32
    %2 = arith.cmpi ne, %1, %c0_i32_0 : i32
    scf.if %2 {
      %c0_75 = arith.constant 0 : index
      %c0_76 = arith.constant 0 : index
      %258 = vector.load %arg3[%c0_75, %c0_76] : memref<8x128xf32, #tpu.memory_space<vmem>>, vector<8x128xf32>
      %c0_77 = arith.constant 0 : index
      %c0_78 = arith.constant 0 : index
      %259 = vector.load %arg9[%c0_77, %c0_78] : memref<8x128xf32, #tpu.memory_space<vmem>>, vector<8x128xf32>
      tpu.vector_store %arg9[%c0_77, %c0_78], %258 {strides = array<i32>} : memref<8x128xf32, #tpu.memory_space<vmem>>, vector<8x128xf32>,
    } else {
    }
    %c0 = arith.constant 0 : index
    %c0_1 = arith.constant 0 : index
    %c0_2 = arith.constant 0 : index
    %3 = vector.load %arg2[%c0, %c0_1, %c0_2] : memref<8x8x128xbf16, #tpu.memory_space<vmem>>, vector<8x8x128xbf16>
    %4 = vector.shape_cast %3 : vector<8x8x128xbf16> to vector<64x128xbf16>
    %c0_3 = arith.constant 0 : index
    %c0_4 = arith.constant 0 : index
    %5 = vector.load %arg4[%c0_3, %c0_4] : memref<128x384xbf16, #tpu.memory_space<vmem>>, vector<128x384xbf16>
    %cst = arith.constant dense<0.000000e+00> : vector<64x384xf32>
    %6 = tpu.matmul %4, %5, %cst {dimension_numbers = #tpu.dot_dimension_numbers<[1], [0], [0], [1], [0, 0, 1, 1], [], []>} : vector<64x128xbf16>, vector<128x384xbf16>, vector<64x384xf32> -> vector<64x384xf32>
    %c0_5 = arith.constant 0 : index
    %c0_6 = arith.constant 0 : index
    %7 = vector.load %arg6[%c0_5, %c0_6] : memref<1x384xf32, #tpu.memory_space<vmem>>, vector<1x384xf32>
    %8 = vector.broadcast %7 : vector<1x384xf32> to vector<64x384xf32>
    %9 = arith.addf %6, %8 : vector<64x384xf32>
    %10 = vector.shape_cast %9 : vector<64x384xf32> to vector<8x8x384xf32>
    %c0_7 = arith.constant 0 : index
    %c0_8 = arith.constant 0 : index
    %c0_9 = arith.constant 0 : index
    %11 = vector.load %arg10[%c0_7, %c0_8, %c0_9] : memref<8x8x384xf32, #tpu.memory_space<vmem>>, vector<8x8x384xf32>
    tpu.vector_store %arg10[%c0_7, %c0_8, %c0_9], %10 {strides = array<i32>} : memref<8x8x384xf32, #tpu.memory_space<vmem>>, vector<8x8x384xf32>,
    %c0_10 = arith.constant 0 : index
    %c0_11 = arith.constant 0 : index
    %12 = vector.load %arg5[%c0_10, %c0_11] : memref<128x384xbf16, #tpu.memory_space<vmem>>, vector<128x384xbf16>
    %c0_12 = arith.constant 0 : index
    %c0_13 = arith.constant 0 : index
    %13 = vector.load %arg7[%c0_12, %c0_13] : memref<1x128xf32, #tpu.memory_space<vmem>>, vector<1x128xf32>
    %14 = vector.shape_cast %13 : vector<1x128xf32> to vector<1x128xf32>
    %15 = vector.broadcast %14 : vector<1x128xf32> to vector<8x128xf32>
    %c0_14 = arith.constant 0 : index
    %c0_15 = arith.constant 0 : index
    %16 = vector.load %arg9[%c0_14, %c0_15] : memref<8x128xf32, #tpu.memory_space<vmem>>, vector<8x128xf32>
    %c0_i32_16 = arith.constant 0 : i32
    %17 = arith.index_cast %c0_i32_16 : i32 to index
    %c0_17 = arith.constant 0 : index
    %c0_18 = arith.constant 0 : index
    %18 = vector.load %arg10[%17, %c0_17, %c0_18] : memref<8x8x384xf32, #tpu.memory_space<vmem>>, vector<1x8x384xf32>
    %19 = vector.shape_cast %18 : vector<1x8x384xf32> to vector<8x384xf32>
    %20 = arith.truncf %16 : vector<8x128xf32> to vector<8x128xbf16>
    %cst_19 = arith.constant dense<0.000000e+00> : vector<8x384xf32>
    %21 = tpu.matmul %20, %12, %cst_19 {dimension_numbers = #tpu.dot_dimension_numbers<[1], [0], [0], [1], [0, 0, 1, 1], [], []>} : vector<8x128xbf16>, vector<128x384xbf16>, vector<8x384xf32> -> vector<8x384xf32>
    %22 = vector.extract_strided_slice %19 {offsets = [0, 0], sizes = [8, 256], strides = [1, 1]} : vector<8x384xf32> to vector<8x256xf32>
    %23 = vector.extract_strided_slice %21 {offsets = [0, 0], sizes = [8, 256], strides = [1, 1]} : vector<8x384xf32> to vector<8x256xf32>
    %24 = arith.addf %22, %23 : vector<8x256xf32>
    %25 = arith.negf %24 : vector<8x256xf32>
    %26 = math.exp %25 : vector<8x256xf32>
    %cst_20 = arith.constant 1.000000e+00 : f32
    %27 = vector.broadcast %cst_20 : f32 to vector<8x256xf32>
    %28 = arith.addf %27, %26 : vector<8x256xf32>
    %29 = arith.divf %27, %28 : vector<8x256xf32>
    %30 = vector.extract_strided_slice %29 {offsets = [0, 0], sizes = [8, 128], strides = [1, 1]} : vector<8x256xf32> to vector<8x128xf32>
    %31 = vector.extract_strided_slice %29 {offsets = [0, 128], sizes = [8, 128], strides = [1, 1]} : vector<8x256xf32> to vector<8x128xf32>
    %32 = vector.extract_strided_slice %19 {offsets = [0, 256], sizes = [8, 128], strides = [1, 1]} : vector<8x384xf32> to vector<8x128xf32>
    %33 = vector.extract_strided_slice %21 {offsets = [0, 256], sizes = [8, 128], strides = [1, 1]} : vector<8x384xf32> to vector<8x128xf32>
    %34 = arith.addf %33, %15 : vector<8x128xf32>
    %35 = arith.mulf %30, %34 : vector<8x128xf32>
    %36 = arith.addf %32, %35 : vector<8x128xf32>
    %37 = math.tanh %36 : vector<8x128xf32>
    %cst_21 = arith.constant 1.000000e+00 : f32
    %38 = vector.broadcast %cst_21 : f32 to vector<8x128xf32>
    %39 = arith.subf %38, %31 : vector<8x128xf32>
    %40 = arith.mulf %39, %37 : vector<8x128xf32>
    %41 = arith.mulf %31, %16 : vector<8x128xf32>
    %42 = arith.addf %40, %41 : vector<8x128xf32>
    %43 = arith.index_cast %c0_i32_16 : i32 to index
    %c0_22 = arith.constant 0 : index
    %c0_23 = arith.constant 0 : index
    %44 = vector.load %arg8[%43, %c0_22, %c0_23] : memref<8x8x128xf32, #tpu.memory_space<vmem>>, vector<1x8x128xf32>
    %45 = vector.shape_cast %44 : vector<1x8x128xf32> to vector<8x128xf32>
    %46 = vector.shape_cast %42 : vector<8x128xf32> to vector<1x8x128xf32>
    tpu.vector_store %arg8[%43, %c0_22, %c0_23], %46 {strides = array<i32>} : memref<8x8x128xf32, #tpu.memory_space<vmem>>, vector<1x8x128xf32>,
    %c1_i32 = arith.constant 1 : i32
    %47 = arith.index_cast %c1_i32 : i32 to index
    %c0_24 = arith.constant 0 : index
    %c0_25 = arith.constant 0 : index
    %48 = vector.load %arg10[%47, %c0_24, %c0_25] : memref<8x8x384xf32, #tpu.memory_space<vmem>>, vector<1x8x384xf32>
    %49 = vector.shape_cast %48 : vector<1x8x384xf32> to vector<8x384xf32>
    %50 = arith.truncf %42 : vector<8x128xf32> to vector<8x128xbf16>
    %cst_26 = arith.constant dense<0.000000e+00> : vector<8x384xf32>
    %51 = tpu.matmul %50, %12, %cst_26 {dimension_numbers = #tpu.dot_dimension_numbers<[1], [0], [0], [1], [0, 0, 1, 1], [], []>} : vector<8x128xbf16>, vector<128x384xbf16>, vector<8x384xf32> -> vector<8x384xf32>
    %52 = vector.extract_strided_slice %49 {offsets = [0, 0], sizes = [8, 256], strides = [1, 1]} : vector<8x384xf32> to vector<8x256xf32>
    %53 = vector.extract_strided_slice %51 {offsets = [0, 0], sizes = [8, 256], strides = [1, 1]} : vector<8x384xf32> to vector<8x256xf32>
    %54 = arith.addf %52, %53 : vector<8x256xf32>
    %55 = arith.negf %54 : vector<8x256xf32>
    %56 = math.exp %55 : vector<8x256xf32>
    %cst_27 = arith.constant 1.000000e+00 : f32
    %57 = vector.broadcast %cst_27 : f32 to vector<8x256xf32>
    %58 = arith.addf %57, %56 : vector<8x256xf32>
    %59 = arith.divf %57, %58 : vector<8x256xf32>
    %60 = vector.extract_strided_slice %59 {offsets = [0, 0], sizes = [8, 128], strides = [1, 1]} : vector<8x256xf32> to vector<8x128xf32>
    %61 = vector.extract_strided_slice %59 {offsets = [0, 128], sizes = [8, 128], strides = [1, 1]} : vector<8x256xf32> to vector<8x128xf32>
    %62 = vector.extract_strided_slice %49 {offsets = [0, 256], sizes = [8, 128], strides = [1, 1]} : vector<8x384xf32> to vector<8x128xf32>
    %63 = vector.extract_strided_slice %51 {offsets = [0, 256], sizes = [8, 128], strides = [1, 1]} : vector<8x384xf32> to vector<8x128xf32>
    %64 = arith.addf %63, %15 : vector<8x128xf32>
    %65 = arith.mulf %60, %64 : vector<8x128xf32>
    %66 = arith.addf %62, %65 : vector<8x128xf32>
    %67 = math.tanh %66 : vector<8x128xf32>
    %cst_28 = arith.constant 1.000000e+00 : f32
    %68 = vector.broadcast %cst_28 : f32 to vector<8x128xf32>
    %69 = arith.subf %68, %61 : vector<8x128xf32>
    %70 = arith.mulf %69, %67 : vector<8x128xf32>
    %71 = arith.mulf %61, %42 : vector<8x128xf32>
    %72 = arith.addf %70, %71 : vector<8x128xf32>
    %73 = arith.index_cast %c1_i32 : i32 to index
    %c0_29 = arith.constant 0 : index
    %c0_30 = arith.constant 0 : index
    %74 = vector.load %arg8[%73, %c0_29, %c0_30] : memref<8x8x128xf32, #tpu.memory_space<vmem>>, vector<1x8x128xf32>
    %75 = vector.shape_cast %74 : vector<1x8x128xf32> to vector<8x128xf32>
    %76 = vector.shape_cast %72 : vector<8x128xf32> to vector<1x8x128xf32>
    tpu.vector_store %arg8[%73, %c0_29, %c0_30], %76 {strides = array<i32>} : memref<8x8x128xf32, #tpu.memory_space<vmem>>, vector<1x8x128xf32>,
    %c2_i32 = arith.constant 2 : i32
    %77 = arith.index_cast %c2_i32 : i32 to index
    %c0_31 = arith.constant 0 : index
    %c0_32 = arith.constant 0 : index
    %78 = vector.load %arg10[%77, %c0_31, %c0_32] : memref<8x8x384xf32, #tpu.memory_space<vmem>>, vector<1x8x384xf32>
    %79 = vector.shape_cast %78 : vector<1x8x384xf32> to vector<8x384xf32>
    %80 = arith.truncf %72 : vector<8x128xf32> to vector<8x128xbf16>
    %cst_33 = arith.constant dense<0.000000e+00> : vector<8x384xf32>
    %81 = tpu.matmul %80, %12, %cst_33 {dimension_numbers = #tpu.dot_dimension_numbers<[1], [0], [0], [1], [0, 0, 1, 1], [], []>} : vector<8x128xbf16>, vector<128x384xbf16>, vector<8x384xf32> -> vector<8x384xf32>
    %82 = vector.extract_strided_slice %79 {offsets = [0, 0], sizes = [8, 256], strides = [1, 1]} : vector<8x384xf32> to vector<8x256xf32>
    %83 = vector.extract_strided_slice %81 {offsets = [0, 0], sizes = [8, 256], strides = [1, 1]} : vector<8x384xf32> to vector<8x256xf32>
    %84 = arith.addf %82, %83 : vector<8x256xf32>
    %85 = arith.negf %84 : vector<8x256xf32>
    %86 = math.exp %85 : vector<8x256xf32>
    %cst_34 = arith.constant 1.000000e+00 : f32
    %87 = vector.broadcast %cst_34 : f32 to vector<8x256xf32>
    %88 = arith.addf %87, %86 : vector<8x256xf32>
    %89 = arith.divf %87, %88 : vector<8x256xf32>
    %90 = vector.extract_strided_slice %89 {offsets = [0, 0], sizes = [8, 128], strides = [1, 1]} : vector<8x256xf32> to vector<8x128xf32>
    %91 = vector.extract_strided_slice %89 {offsets = [0, 128], sizes = [8, 128], strides = [1, 1]} : vector<8x256xf32> to vector<8x128xf32>
    %92 = vector.extract_strided_slice %79 {offsets = [0, 256], sizes = [8, 128], strides = [1, 1]} : vector<8x384xf32> to vector<8x128xf32>
    %93 = vector.extract_strided_slice %81 {offsets = [0, 256], sizes = [8, 128], strides = [1, 1]} : vector<8x384xf32> to vector<8x128xf32>
    %94 = arith.addf %93, %15 : vector<8x128xf32>
    %95 = arith.mulf %90, %94 : vector<8x128xf32>
    %96 = arith.addf %92, %95 : vector<8x128xf32>
    %97 = math.tanh %96 : vector<8x128xf32>
    %cst_35 = arith.constant 1.000000e+00 : f32
    %98 = vector.broadcast %cst_35 : f32 to vector<8x128xf32>
    %99 = arith.subf %98, %91 : vector<8x128xf32>
    %100 = arith.mulf %99, %97 : vector<8x128xf32>
    %101 = arith.mulf %91, %72 : vector<8x128xf32>
    %102 = arith.addf %100, %101 : vector<8x128xf32>
    %103 = arith.index_cast %c2_i32 : i32 to index
    %c0_36 = arith.constant 0 : index
    %c0_37 = arith.constant 0 : index
    %104 = vector.load %arg8[%103, %c0_36, %c0_37] : memref<8x8x128xf32, #tpu.memory_space<vmem>>, vector<1x8x128xf32>
    %105 = vector.shape_cast %104 : vector<1x8x128xf32> to vector<8x128xf32>
    %106 = vector.shape_cast %102 : vector<8x128xf32> to vector<1x8x128xf32>
    tpu.vector_store %arg8[%103, %c0_36, %c0_37], %106 {strides = array<i32>} : memref<8x8x128xf32, #tpu.memory_space<vmem>>, vector<1x8x128xf32>,
    %c3_i32 = arith.constant 3 : i32
    %107 = arith.index_cast %c3_i32 : i32 to index
    %c0_38 = arith.constant 0 : index
    %c0_39 = arith.constant 0 : index
    %108 = vector.load %arg10[%107, %c0_38, %c0_39] : memref<8x8x384xf32, #tpu.memory_space<vmem>>, vector<1x8x384xf32>
    %109 = vector.shape_cast %108 : vector<1x8x384xf32> to vector<8x384xf32>
    %110 = arith.truncf %102 : vector<8x128xf32> to vector<8x128xbf16>
    %cst_40 = arith.constant dense<0.000000e+00> : vector<8x384xf32>
    %111 = tpu.matmul %110, %12, %cst_40 {dimension_numbers = #tpu.dot_dimension_numbers<[1], [0], [0], [1], [0, 0, 1, 1], [], []>} : vector<8x128xbf16>, vector<128x384xbf16>, vector<8x384xf32> -> vector<8x384xf32>
    %112 = vector.extract_strided_slice %109 {offsets = [0, 0], sizes = [8, 256], strides = [1, 1]} : vector<8x384xf32> to vector<8x256xf32>
    %113 = vector.extract_strided_slice %111 {offsets = [0, 0], sizes = [8, 256], strides = [1, 1]} : vector<8x384xf32> to vector<8x256xf32>
    %114 = arith.addf %112, %113 : vector<8x256xf32>
    %115 = arith.negf %114 : vector<8x256xf32>
    %116 = math.exp %115 : vector<8x256xf32>
    %cst_41 = arith.constant 1.000000e+00 : f32
    %117 = vector.broadcast %cst_41 : f32 to vector<8x256xf32>
    %118 = arith.addf %117, %116 : vector<8x256xf32>
    %119 = arith.divf %117, %118 : vector<8x256xf32>
    %120 = vector.extract_strided_slice %119 {offsets = [0, 0], sizes = [8, 128], strides = [1, 1]} : vector<8x256xf32> to vector<8x128xf32>
    %121 = vector.extract_strided_slice %119 {offsets = [0, 128], sizes = [8, 128], strides = [1, 1]} : vector<8x256xf32> to vector<8x128xf32>
    %122 = vector.extract_strided_slice %109 {offsets = [0, 256], sizes = [8, 128], strides = [1, 1]} : vector<8x384xf32> to vector<8x128xf32>
    %123 = vector.extract_strided_slice %111 {offsets = [0, 256], sizes = [8, 128], strides = [1, 1]} : vector<8x384xf32> to vector<8x128xf32>
    %124 = arith.addf %123, %15 : vector<8x128xf32>
    %125 = arith.mulf %120, %124 : vector<8x128xf32>
    %126 = arith.addf %122, %125 : vector<8x128xf32>
    %127 = math.tanh %126 : vector<8x128xf32>
    %cst_42 = arith.constant 1.000000e+00 : f32
    %128 = vector.broadcast %cst_42 : f32 to vector<8x128xf32>
    %129 = arith.subf %128, %121 : vector<8x128xf32>
    %130 = arith.mulf %129, %127 : vector<8x128xf32>
    %131 = arith.mulf %121, %102 : vector<8x128xf32>
    %132 = arith.addf %130, %131 : vector<8x128xf32>
    %133 = arith.index_cast %c3_i32 : i32 to index
    %c0_43 = arith.constant 0 : index
    %c0_44 = arith.constant 0 : index
    %134 = vector.load %arg8[%133, %c0_43, %c0_44] : memref<8x8x128xf32, #tpu.memory_space<vmem>>, vector<1x8x128xf32>
    %135 = vector.shape_cast %134 : vector<1x8x128xf32> to vector<8x128xf32>
    %136 = vector.shape_cast %132 : vector<8x128xf32> to vector<1x8x128xf32>
    tpu.vector_store %arg8[%133, %c0_43, %c0_44], %136 {strides = array<i32>} : memref<8x8x128xf32, #tpu.memory_space<vmem>>, vector<1x8x128xf32>,
    %c4_i32 = arith.constant 4 : i32
    %137 = arith.index_cast %c4_i32 : i32 to index
    %c0_45 = arith.constant 0 : index
    %c0_46 = arith.constant 0 : index
    %138 = vector.load %arg10[%137, %c0_45, %c0_46] : memref<8x8x384xf32, #tpu.memory_space<vmem>>, vector<1x8x384xf32>
    %139 = vector.shape_cast %138 : vector<1x8x384xf32> to vector<8x384xf32>
    %140 = arith.truncf %132 : vector<8x128xf32> to vector<8x128xbf16>
    %cst_47 = arith.constant dense<0.000000e+00> : vector<8x384xf32>
    %141 = tpu.matmul %140, %12, %cst_47 {dimension_numbers = #tpu.dot_dimension_numbers<[1], [0], [0], [1], [0, 0, 1, 1], [], []>} : vector<8x128xbf16>, vector<128x384xbf16>, vector<8x384xf32> -> vector<8x384xf32>
    %142 = vector.extract_strided_slice %139 {offsets = [0, 0], sizes = [8, 256], strides = [1, 1]} : vector<8x384xf32> to vector<8x256xf32>
    %143 = vector.extract_strided_slice %141 {offsets = [0, 0], sizes = [8, 256], strides = [1, 1]} : vector<8x384xf32> to vector<8x256xf32>
    %144 = arith.addf %142, %143 : vector<8x256xf32>
    %145 = arith.negf %144 : vector<8x256xf32>
    %146 = math.exp %145 : vector<8x256xf32>
    %cst_48 = arith.constant 1.000000e+00 : f32
    %147 = vector.broadcast %cst_48 : f32 to vector<8x256xf32>
    %148 = arith.addf %147, %146 : vector<8x256xf32>
    %149 = arith.divf %147, %148 : vector<8x256xf32>
    %150 = vector.extract_strided_slice %149 {offsets = [0, 0], sizes = [8, 128], strides = [1, 1]} : vector<8x256xf32> to vector<8x128xf32>
    %151 = vector.extract_strided_slice %149 {offsets = [0, 128], sizes = [8, 128], strides = [1, 1]} : vector<8x256xf32> to vector<8x128xf32>
    %152 = vector.extract_strided_slice %139 {offsets = [0, 256], sizes = [8, 128], strides = [1, 1]} : vector<8x384xf32> to vector<8x128xf32>
    %153 = vector.extract_strided_slice %141 {offsets = [0, 256], sizes = [8, 128], strides = [1, 1]} : vector<8x384xf32> to vector<8x128xf32>
    %154 = arith.addf %153, %15 : vector<8x128xf32>
    %155 = arith.mulf %150, %154 : vector<8x128xf32>
    %156 = arith.addf %152, %155 : vector<8x128xf32>
    %157 = math.tanh %156 : vector<8x128xf32>
    %cst_49 = arith.constant 1.000000e+00 : f32
    %158 = vector.broadcast %cst_49 : f32 to vector<8x128xf32>
    %159 = arith.subf %158, %151 : vector<8x128xf32>
    %160 = arith.mulf %159, %157 : vector<8x128xf32>
    %161 = arith.mulf %151, %132 : vector<8x128xf32>
    %162 = arith.addf %160, %161 : vector<8x128xf32>
    %163 = arith.index_cast %c4_i32 : i32 to index
    %c0_50 = arith.constant 0 : index
    %c0_51 = arith.constant 0 : index
    %164 = vector.load %arg8[%163, %c0_50, %c0_51] : memref<8x8x128xf32, #tpu.memory_space<vmem>>, vector<1x8x128xf32>
    %165 = vector.shape_cast %164 : vector<1x8x128xf32> to vector<8x128xf32>
    %166 = vector.shape_cast %162 : vector<8x128xf32> to vector<1x8x128xf32>
    tpu.vector_store %arg8[%163, %c0_50, %c0_51], %166 {strides = array<i32>} : memref<8x8x128xf32, #tpu.memory_space<vmem>>, vector<1x8x128xf32>,
    %c5_i32 = arith.constant 5 : i32
    %167 = arith.index_cast %c5_i32 : i32 to index
    %c0_52 = arith.constant 0 : index
    %c0_53 = arith.constant 0 : index
    %168 = vector.load %arg10[%167, %c0_52, %c0_53] : memref<8x8x384xf32, #tpu.memory_space<vmem>>, vector<1x8x384xf32>
    %169 = vector.shape_cast %168 : vector<1x8x384xf32> to vector<8x384xf32>
    %170 = arith.truncf %162 : vector<8x128xf32> to vector<8x128xbf16>
    %cst_54 = arith.constant dense<0.000000e+00> : vector<8x384xf32>
    %171 = tpu.matmul %170, %12, %cst_54 {dimension_numbers = #tpu.dot_dimension_numbers<[1], [0], [0], [1], [0, 0, 1, 1], [], []>} : vector<8x128xbf16>, vector<128x384xbf16>, vector<8x384xf32> -> vector<8x384xf32>
    %172 = vector.extract_strided_slice %169 {offsets = [0, 0], sizes = [8, 256], strides = [1, 1]} : vector<8x384xf32> to vector<8x256xf32>
    %173 = vector.extract_strided_slice %171 {offsets = [0, 0], sizes = [8, 256], strides = [1, 1]} : vector<8x384xf32> to vector<8x256xf32>
    %174 = arith.addf %172, %173 : vector<8x256xf32>
    %175 = arith.negf %174 : vector<8x256xf32>
    %176 = math.exp %175 : vector<8x256xf32>
    %cst_55 = arith.constant 1.000000e+00 : f32
    %177 = vector.broadcast %cst_55 : f32 to vector<8x256xf32>
    %178 = arith.addf %177, %176 : vector<8x256xf32>
    %179 = arith.divf %177, %178 : vector<8x256xf32>
    %180 = vector.extract_strided_slice %179 {offsets = [0, 0], sizes = [8, 128], strides = [1, 1]} : vector<8x256xf32> to vector<8x128xf32>
    %181 = vector.extract_strided_slice %179 {offsets = [0, 128], sizes = [8, 128], strides = [1, 1]} : vector<8x256xf32> to vector<8x128xf32>
    %182 = vector.extract_strided_slice %169 {offsets = [0, 256], sizes = [8, 128], strides = [1, 1]} : vector<8x384xf32> to vector<8x128xf32>
    %183 = vector.extract_strided_slice %171 {offsets = [0, 256], sizes = [8, 128], strides = [1, 1]} : vector<8x384xf32> to vector<8x128xf32>
    %184 = arith.addf %183, %15 : vector<8x128xf32>
    %185 = arith.mulf %180, %184 : vector<8x128xf32>
    %186 = arith.addf %182, %185 : vector<8x128xf32>
    %187 = math.tanh %186 : vector<8x128xf32>
    %cst_56 = arith.constant 1.000000e+00 : f32
    %188 = vector.broadcast %cst_56 : f32 to vector<8x128xf32>
    %189 = arith.subf %188, %181 : vector<8x128xf32>
    %190 = arith.mulf %189, %187 : vector<8x128xf32>
    %191 = arith.mulf %181, %162 : vector<8x128xf32>
    %192 = arith.addf %190, %191 : vector<8x128xf32>
    %193 = arith.index_cast %c5_i32 : i32 to index
    %c0_57 = arith.constant 0 : index
    %c0_58 = arith.constant 0 : index
    %194 = vector.load %arg8[%193, %c0_57, %c0_58] : memref<8x8x128xf32, #tpu.memory_space<vmem>>, vector<1x8x128xf32>
    %195 = vector.shape_cast %194 : vector<1x8x128xf32> to vector<8x128xf32>
    %196 = vector.shape_cast %192 : vector<8x128xf32> to vector<1x8x128xf32>
    tpu.vector_store %arg8[%193, %c0_57, %c0_58], %196 {strides = array<i32>} : memref<8x8x128xf32, #tpu.memory_space<vmem>>, vector<1x8x128xf32>,
    %c6_i32 = arith.constant 6 : i32
    %197 = arith.index_cast %c6_i32 : i32 to index
    %c0_59 = arith.constant 0 : index
    %c0_60 = arith.constant 0 : index
    %198 = vector.load %arg10[%197, %c0_59, %c0_60] : memref<8x8x384xf32, #tpu.memory_space<vmem>>, vector<1x8x384xf32>
    %199 = vector.shape_cast %198 : vector<1x8x384xf32> to vector<8x384xf32>
    %200 = arith.truncf %192 : vector<8x128xf32> to vector<8x128xbf16>
    %cst_61 = arith.constant dense<0.000000e+00> : vector<8x384xf32>
    %201 = tpu.matmul %200, %12, %cst_61 {dimension_numbers = #tpu.dot_dimension_numbers<[1], [0], [0], [1], [0, 0, 1, 1], [], []>} : vector<8x128xbf16>, vector<128x384xbf16>, vector<8x384xf32> -> vector<8x384xf32>
    %202 = vector.extract_strided_slice %199 {offsets = [0, 0], sizes = [8, 256], strides = [1, 1]} : vector<8x384xf32> to vector<8x256xf32>
    %203 = vector.extract_strided_slice %201 {offsets = [0, 0], sizes = [8, 256], strides = [1, 1]} : vector<8x384xf32> to vector<8x256xf32>
    %204 = arith.addf %202, %203 : vector<8x256xf32>
    %205 = arith.negf %204 : vector<8x256xf32>
    %206 = math.exp %205 : vector<8x256xf32>
    %cst_62 = arith.constant 1.000000e+00 : f32
    %207 = vector.broadcast %cst_62 : f32 to vector<8x256xf32>
    %208 = arith.addf %207, %206 : vector<8x256xf32>
    %209 = arith.divf %207, %208 : vector<8x256xf32>
    %210 = vector.extract_strided_slice %209 {offsets = [0, 0], sizes = [8, 128], strides = [1, 1]} : vector<8x256xf32> to vector<8x128xf32>
    %211 = vector.extract_strided_slice %209 {offsets = [0, 128], sizes = [8, 128], strides = [1, 1]} : vector<8x256xf32> to vector<8x128xf32>
    %212 = vector.extract_strided_slice %199 {offsets = [0, 256], sizes = [8, 128], strides = [1, 1]} : vector<8x384xf32> to vector<8x128xf32>
    %213 = vector.extract_strided_slice %201 {offsets = [0, 256], sizes = [8, 128], strides = [1, 1]} : vector<8x384xf32> to vector<8x128xf32>
    %214 = arith.addf %213, %15 : vector<8x128xf32>
    %215 = arith.mulf %210, %214 : vector<8x128xf32>
    %216 = arith.addf %212, %215 : vector<8x128xf32>
    %217 = math.tanh %216 : vector<8x128xf32>
    %cst_63 = arith.constant 1.000000e+00 : f32
    %218 = vector.broadcast %cst_63 : f32 to vector<8x128xf32>
    %219 = arith.subf %218, %211 : vector<8x128xf32>
    %220 = arith.mulf %219, %217 : vector<8x128xf32>
    %221 = arith.mulf %211, %192 : vector<8x128xf32>
    %222 = arith.addf %220, %221 : vector<8x128xf32>
    %223 = arith.index_cast %c6_i32 : i32 to index
    %c0_64 = arith.constant 0 : index
    %c0_65 = arith.constant 0 : index
    %224 = vector.load %arg8[%223, %c0_64, %c0_65] : memref<8x8x128xf32, #tpu.memory_space<vmem>>, vector<1x8x128xf32>
    %225 = vector.shape_cast %224 : vector<1x8x128xf32> to vector<8x128xf32>
    %226 = vector.shape_cast %222 : vector<8x128xf32> to vector<1x8x128xf32>
    tpu.vector_store %arg8[%223, %c0_64, %c0_65], %226 {strides = array<i32>} : memref<8x8x128xf32, #tpu.memory_space<vmem>>, vector<1x8x128xf32>,
    %c7_i32 = arith.constant 7 : i32
    %227 = arith.index_cast %c7_i32 : i32 to index
    %c0_66 = arith.constant 0 : index
    %c0_67 = arith.constant 0 : index
    %228 = vector.load %arg10[%227, %c0_66, %c0_67] : memref<8x8x384xf32, #tpu.memory_space<vmem>>, vector<1x8x384xf32>
    %229 = vector.shape_cast %228 : vector<1x8x384xf32> to vector<8x384xf32>
    %230 = arith.truncf %222 : vector<8x128xf32> to vector<8x128xbf16>
    %cst_68 = arith.constant dense<0.000000e+00> : vector<8x384xf32>
    %231 = tpu.matmul %230, %12, %cst_68 {dimension_numbers = #tpu.dot_dimension_numbers<[1], [0], [0], [1], [0, 0, 1, 1], [], []>} : vector<8x128xbf16>, vector<128x384xbf16>, vector<8x384xf32> -> vector<8x384xf32>
    %232 = vector.extract_strided_slice %229 {offsets = [0, 0], sizes = [8, 256], strides = [1, 1]} : vector<8x384xf32> to vector<8x256xf32>
    %233 = vector.extract_strided_slice %231 {offsets = [0, 0], sizes = [8, 256], strides = [1, 1]} : vector<8x384xf32> to vector<8x256xf32>
    %234 = arith.addf %232, %233 : vector<8x256xf32>
    %235 = arith.negf %234 : vector<8x256xf32>
    %236 = math.exp %235 : vector<8x256xf32>
    %cst_69 = arith.constant 1.000000e+00 : f32
    %237 = vector.broadcast %cst_69 : f32 to vector<8x256xf32>
    %238 = arith.addf %237, %236 : vector<8x256xf32>
    %239 = arith.divf %237, %238 : vector<8x256xf32>
    %240 = vector.extract_strided_slice %239 {offsets = [0, 0], sizes = [8, 128], strides = [1, 1]} : vector<8x256xf32> to vector<8x128xf32>
    %241 = vector.extract_strided_slice %239 {offsets = [0, 128], sizes = [8, 128], strides = [1, 1]} : vector<8x256xf32> to vector<8x128xf32>
    %242 = vector.extract_strided_slice %229 {offsets = [0, 256], sizes = [8, 128], strides = [1, 1]} : vector<8x384xf32> to vector<8x128xf32>
    %243 = vector.extract_strided_slice %231 {offsets = [0, 256], sizes = [8, 128], strides = [1, 1]} : vector<8x384xf32> to vector<8x128xf32>
    %244 = arith.addf %243, %15 : vector<8x128xf32>
    %245 = arith.mulf %240, %244 : vector<8x128xf32>
    %246 = arith.addf %242, %245 : vector<8x128xf32>
    %247 = math.tanh %246 : vector<8x128xf32>
    %cst_70 = arith.constant 1.000000e+00 : f32
    %248 = vector.broadcast %cst_70 : f32 to vector<8x128xf32>
    %249 = arith.subf %248, %241 : vector<8x128xf32>
    %250 = arith.mulf %249, %247 : vector<8x128xf32>
    %251 = arith.mulf %241, %222 : vector<8x128xf32>
    %252 = arith.addf %250, %251 : vector<8x128xf32>
    %253 = arith.index_cast %c7_i32 : i32 to index
    %c0_71 = arith.constant 0 : index
    %c0_72 = arith.constant 0 : index
    %254 = vector.load %arg8[%253, %c0_71, %c0_72] : memref<8x8x128xf32, #tpu.memory_space<vmem>>, vector<1x8x128xf32>
    %255 = vector.shape_cast %254 : vector<1x8x128xf32> to vector<8x128xf32>
    %256 = vector.shape_cast %252 : vector<8x128xf32> to vector<1x8x128xf32>
    tpu.vector_store %arg8[%253, %c0_71, %c0_72], %256 {strides = array<i32>} : memref<8x8x128xf32, #tpu.memory_space<vmem>>, vector<1x8x128xf32>,
    %c8_i32 = arith.constant 8 : i32
    %c0_73 = arith.constant 0 : index
    %c0_74 = arith.constant 0 : index
    %257 = vector.load %arg9[%c0_73, %c0_74] : memref<8x128xf32, #tpu.memory_space<vmem>>, vector<8x128xf32>
    tpu.vector_store %arg9[%c0_73, %c0_74], %252 {strides = array<i32>} : memref<8x128xf32, #tpu.memory_space<vmem>>, vector<8x128xf32>,
    return
  }
  func.func @transform_0(%arg0: i32, %arg1: i32) -> (i32, i32, i32) {
    %c0_i32 = arith.constant 0 : i32
    %c0_i32_0 = arith.constant 0 : i32
    return %arg1, %arg0, %c0_i32 : i32, i32, i32
  }
  func.func @transform_1(%arg0: i32, %arg1: i32) -> (i32, i32) {
    %c0_i32 = arith.constant 0 : i32
    %c0_i32_0 = arith.constant 0 : i32
    return %arg0, %c0_i32 : i32, i32
  }
  func.func @transform_2(%arg0: i32, %arg1: i32) -> (i32, i32) {
    %c0_i32 = arith.constant 0 : i32
    %c0_i32_0 = arith.constant 0 : i32
    %c0_i32_1 = arith.constant 0 : i32
    return %c0_i32, %c0_i32_0 : i32, i32
  }
  func.func @transform_3(%arg0: i32, %arg1: i32) -> (i32, i32) {
    %c0_i32 = arith.constant 0 : i32
    %c0_i32_0 = arith.constant 0 : i32
    %c0_i32_1 = arith.constant 0 : i32
    return %c0_i32, %c0_i32_0 : i32, i32
  }
  func.func @transform_4(%arg0: i32, %arg1: i32) -> (i32, i32) {
    %c0_i32 = arith.constant 0 : i32
    %c0_i32_0 = arith.constant 0 : i32
    %c0_i32_1 = arith.constant 0 : i32
    return %c0_i32, %c0_i32_0 : i32, i32
  }
  func.func @transform_5(%arg0: i32, %arg1: i32) -> (i32, i32) {
    %c0_i32 = arith.constant 0 : i32
    %c0_i32_0 = arith.constant 0 : i32
    %c0_i32_1 = arith.constant 0 : i32
    return %c0_i32, %c0_i32_0 : i32, i32
  }
  func.func @transform_6(%arg0: i32, %arg1: i32) -> (i32, i32, i32) {
    %c0_i32 = arith.constant 0 : i32
    %c0_i32_0 = arith.constant 0 : i32
    return %arg1, %arg0, %c0_i32 : i32, i32, i32
  }
}

</mosaic_0001>

<bundles_post_ra>
// kernel: gru_encoder_forward.1
= control target key start
LH: loop header
LB: loop body
LE: loop exit
PB: predicated region body
PF: predicated region fallthrough
CT: control target
= control target key end

     0   :  { %11 = vsyncpa [#allocation5], 0  ;;  %s2574_s0 = inlined_call_operand.vmem [shape: bf16[8,8,128], index: 0, kind: input, shape index: {}]   ;;  %s2575_s1 = inlined_call_operand.vmem [shape: f32[8,128], index: 1, kind: input, shape index: {}]   ;;  %s2576_s2 = inlined_call_operand.hbm [shape: bf16[128,384], index: 2, kind: input, shape index: {}]   ;;  %s2577_s3 = inlined_call_operand.hbm [shape: bf16[128,384], index: 3, kind: input, shape index: {}]   ;;  %s2578_s4 = inlined_call_operand.vmem [shape: f32[1,384], index: 4, kind: input, shape index: {}]   ;;  %s2579_s5 = inlined_call_operand.vmem [shape: f32[1,128], index: 5, kind: input, shape index: {}]   ;;  %s2580_s6 = inlined_call_operand.vmem [shape: f32[8,8,128], index: 6, kind: output, shape index: {}]  }
   0x1   :  { %12 = vsyncpa [#allocation7], 0  ;;  %s2046_s21 = smov [#allocation4]  }
   0x2   :  { %s22_s22 = sshll.u32 %s2046_s21, 4  ;;  %s23_s22 = int_to_ptr.vmem [resolvable:$true] %s22_s22 }
   0x3   :  { %s2010_s23 = scalar_lea.vmem %s23_s22, 3072  ;;  %p2015_p1 = scmp.lt.s32.totalorder %s23_s22, %s23_s22 }
   0x4   :  { %p2011_p0 = scmp.ne.s32.totalorder %s23_s22, %s2010_s23  ;;  %p2016_p2 = scmp.lt.s32.totalorder %s2010_s23, %s2010_s23 }
   0x6   :  { %p2017_p3 = por %p2016_p2, %p2015_p1 }
   0x8   :  { %p2018_p4 = pnand %p2017_p3, %p2011_p0 }
   0xa   :  { %2021 = shalt.err (!%p2018_p4)
}
   0xb   :  { %s2047_s24 = smov 192   ;;  %s2048_s25 = smov 12  }
   0xc   :  { %28 = dma.hbm_to_vmem [thread:$0]  %s2576_s2, 3072, %s23_s22, [#allocation5], %s2047_s24, %s2047_s24, %s2048_s25  }
   0xd   :  { %s2049_s28 = smov [#allocation6]  }
   0xe   :  { %s34_s29 = sshll.u32 %s2049_s28, 4  ;;  %s35_s29 = int_to_ptr.vmem [resolvable:$true] %s34_s29 }
   0xf   :  { %s2030_s30 = scalar_lea.vmem %s35_s29, 3072  ;;  %p2035_p6 = scmp.lt.s32.totalorder %s35_s29, %s35_s29 }
  0x10   :  { %p2031_p5 = scmp.ne.s32.totalorder %s35_s29, %s2030_s30  ;;  %p2036_p7 = scmp.lt.s32.totalorder %s2030_s30, %s2030_s30 }
  0x12   :  { %p2037_p8 = por %p2036_p7, %p2035_p6 }
  0x14   :  { %p2038_p9 = pnand %p2037_p8, %p2031_p5 }
  0x16   :  { %2041 = shalt.err (!%p2038_p9)
}
  0x17   :  { %40 = dma.hbm_to_vmem [thread:$0]  %s2577_s3, 3072, %s35_s29, [#allocation7], %s2047_s24, %s2047_s24, %s2048_s25  }
  0x18   :  { %2042 = dma.done.wait [#allocation5], 3072  }
  0x19   :  { %2043 = vsyncadd [#allocation5], 4294964224 }
  0x1a   :  { %2044 = dma.done.wait [#allocation7], 3072  }
  0x1b   :  { %2045 = vsyncadd [#allocation7], 4294964224  ;;  %v2581_v0 = vmov 0   ;;  %v1833_v1 = vld [vmem:[#allocation4 + $0xac] ss:$12 sps:$4 sm:$0xff]   ;;  %v1859_v12 = vld [vmem:[%s2574_s0] sm:$0xff]   ;;  %v100_v56 = vlaneseq }
  0x1c   :  { %299 = vmatprep.mubr.bf16.mxu0 %v2581_v0  ;;  %v1835_v2 = vld [vmem:[#allocation4 + $0xa8] ss:$12 sps:$4 sm:$0xff]   ;;  %267 = vmatprep.subr.bf16.mxu0 %v1833_v1  ;;  %v1838_v4 = vld [vmem:[#allocation4 + $0x90] ss:$12 sps:$4 sm:$0xff]   ;;  %v1841_v6 = vld [vmem:[#allocation4 + $0x78] ss:$12 sps:$4 sm:$0xff]  }
  0x1d   :  { %v1836_v3 = vld [vmem:[#allocation4 + $0x94] ss:$12 sps:$4 sm:$0xff]   ;;  %268 = vmatpush1.bf16.msra.mxu0 %v1835_v2  ;;  %v1839_v5 = vld [vmem:[#allocation4 + $0x7c] ss:$12 sps:$4 sm:$0xff]   ;;  %v1842_v7 = vld [vmem:[#allocation4 + $0x64] ss:$12 sps:$4 sm:$0xff]   ;;  %1658 = vmatprep.mubr.bf16.mxu1 %v1859_v12 }
  0x1e   :  { %269 = vmatprep.subr.bf16.mxu0 %v1836_v3  ;;  %v1854_v8 = vld [vmem:[#allocation4 + $0xb0] ss:$12 sps:$4 sm:$0xff]   ;;  %v1844_v9 = vld [vmem:[#allocation4 + $0x60] ss:$12 sps:$4 sm:$0xff]   ;;  %v1858_v11 = vld [vmem:[#allocation4 + $0x98] ss:$12 sps:$4 sm:$0xff]  }
  0x1f   :  { %v1845_v10 = vld [vmem:[#allocation4 + $0x4c] ss:$12 sps:$4 sm:$0xff]   ;;  %1642 = vmatprep.subr.bf16.mxu1 %v1854_v8  ;;  %v1847_v13 = vld [vmem:[#allocation4 + $0x48] ss:$12 sps:$4 sm:$0xff]   ;;  %v1850_v17 = vld [vmem:[#allocation4 + $0x30] ss:$12 sps:$4 sm:$0xff]  }
  0x20   :  { %1643 = vmatpush3.bf16.msra.mxu1 %v1854_v8  ;;  %v1863_v14 = vld [vmem:[#allocation4 + $0x80] ss:$12 sps:$4 sm:$0xff]   ;;  %v1867_v16 = vld [vmem:[#allocation4 + $0x68] ss:$12 sps:$4 sm:$0xff]   ;;  %v1872_v19 = vld [vmem:[#allocation4 + $0x50] ss:$12 sps:$4 sm:$0xff]  }
  0x21   :  { %270 = vmatpush1.bf16.msra.mxu0 %v1838_v4  ;;  %1644 = vmatprep.subr.bf16.mxu1 %v1858_v11  ;;  %v1848_v15 = vld [vmem:[#allocation4 + $0x34] ss:$12 sps:$4 sm:$0xff]   ;;  %v1851_v18 = vld [vmem:[#allocation4 + $0x1c] ss:$12 sps:$4 sm:$0xff]   ;;  %v1853_v20 = vld [vmem:[#allocation4 + $0x18] ss:$12 sps:$4 sm:$0xff]  }
  0x22   :  { %271 = vmatprep.subr.bf16.mxu0 %v1839_v5  ;;  %v1855_v21 = vld [vmem:[#allocation4 + $0x4] ss:$12 sps:$4 sm:$0xff]   ;;  %v1857_v23 = vld [vmem:[#allocation4] ss:$12 sps:$4 sm:$0xff]   ;;  %v2100_v26 = vld [vmem:[#allocation6 + $0xa8] ss:$12 sps:$4 sm:$0xff]  }
  0x23   :  { %v1876_v22 = vld [vmem:[#allocation4 + $0x38] ss:$12 sps:$4 sm:$0xff]   ;;  %v1881_v25 = vld [vmem:[#allocation4 + $0x20] ss:$12 sps:$4 sm:$0xff]   ;;  %v1885_v28 = vld [vmem:[#allocation4 + $0x8] ss:$12 sps:$4 sm:$0xff]  }
  0x24   :  { %1645 = vmatpush3.bf16.msra.mxu1 %v1858_v11  ;;  %v2098_v24 = vld [vmem:[#allocation6 + $0xac] ss:$12 sps:$4 sm:$0xff]   ;;  %v2103_v27 = vld [vmem:[#allocation6 + $0x94] ss:$12 sps:$4 sm:$0xff]   ;;  %v2106_v29 = vld [vmem:[#allocation6 + $0x90] ss:$12 sps:$4 sm:$0xff]  }
  0x25   :  { %272 = vmatpush1.bf16.msra.mxu0 %v1841_v6  ;;  %1646 = vmatprep.subr.bf16.mxu1 %v1863_v14  ;;  %v2110_v30 = vld [vmem:[#allocation6 + $0x7c] ss:$12 sps:$4 sm:$0xff]   ;;  %v2116_v32 = vld [vmem:[#allocation6 + $0x78] ss:$12 sps:$4 sm:$0xff]   ;;  %v2583_v35 = vmov 0.0   ;;  %v1877_v37 = vld [vmem:[%s2574_s0 + $0x10] sm:$0xff]  }
  0x26   :  { %273 = vmatprep.subr.bf16.mxu0 %v1842_v7  ;;  %v1868_v31 = vld [vmem:[%s2574_s0 + $0x8] sm:$0xff]   ;;  %v2119_v33 = vld [vmem:[#allocation6 + $0x64] ss:$12 sps:$4 sm:$0xff]   ;;  %v2142_v41 = vld [vmem:[#allocation6 + $0x34] ss:$12 sps:$4 sm:$0xff]   ;;  %vm2052_vm0 = vmmov 0  }
  0x27   :  { %v2121_v34 = vld [vmem:[#allocation6 + $0xb0] ss:$12 sps:$4 sm:$0xff]   ;;  %v2125_v36 = vld [vmem:[#allocation6 + $0x60] ss:$12 sps:$4 sm:$0xff]   ;;  %v2135_v39 = vld [vmem:[#allocation6 + $0x98] ss:$12 sps:$4 sm:$0xff]  }
  0x28   :  { %1647 = vmatpush3.bf16.msra.mxu1 %v1863_v14  ;;  %v2132_v38 = vld [vmem:[#allocation6 + $0x4c] ss:$12 sps:$4 sm:$0xff]   ;;  %v2139_v40 = vld [vmem:[#allocation6 + $0x48] ss:$12 sps:$4 sm:$0xff]   ;;  %v2152_v44 = vld [vmem:[#allocation6 + $0x30] ss:$12 sps:$4 sm:$0xff]  }
  0x29   :  { %274 = vmatpush1.bf16.msra.mxu0 %v1844_v9  ;;  %1648 = vmatprep.subr.bf16.mxu1 %v1867_v16  ;;  %v2145_v42 = vld [vmem:[#allocation6 + $0x80] ss:$12 sps:$4 sm:$0xff]   ;;  %v1886_v43 = vld [vmem:[%s2574_s0 + $0x18] sm:$0xff]   ;;  %v2159_v46 = vld [vmem:[#allocation6 + $0x68] ss:$12 sps:$4 sm:$0xff]   ;;  %v101_v57 = vshrl.u32 %v100_v56, 7 }
  0x2a   :  { %275 = vmatprep.subr.bf16.mxu0 %v1845_v10  ;;  %v2156_v45 = vld [vmem:[#allocation6 + $0x1c] ss:$12 sps:$4 sm:$0xff]   ;;  %v2165_v47 = vld [vmem:[#allocation6 + $0x18] ss:$12 sps:$4 sm:$0xff]   ;;  %v2175_v50 = vld [vmem:[#allocation6] ss:$12 sps:$4 sm:$0xff]  }
  0x2b   :  { %v2168_v48 = vld [vmem:[#allocation6 + $0x4] ss:$12 sps:$4 sm:$0xff]   ;;  %v2193_v54 = vld [vmem:[#allocation6 + $0x20] ss:$12 sps:$4 sm:$0xff]   ;;  %v2200_v55 = vld [vmem:[#allocation6 + $0x8] ss:$12 sps:$4 sm:$0xff]  }
  0x2c   :  { %1649 = vmatpush3.bf16.msra.mxu1 %v1867_v16  ;;  %v2171_v49 = vld [vmem:[#allocation6 + $0x50] ss:$12 sps:$4 sm:$0xff]   ;;  %v2181_v51 = vld [vmem:[%s2575_s1] sm:$0xff]  ;;  %v102_v58 = vsub.s32 0, %v101_v57  ;;  %v106_v61 = vsub.s32 1, %v101_v57  ;;  %v110_v1 = vsub.s32 2, %v101_v57 }
  0x2d   :  { %276 = vmatpush1.bf16.msra.mxu0 %v1847_v13  ;;  %1650 = vmatprep.subr.bf16.mxu1 %v1872_v19  ;;  %v2185_v52 = vld [vmem:[#allocation6 + $0x38] ss:$12 sps:$4 sm:$0xff]   ;;  %v472_v53 = vpack.c.bf16 %v2181_v51, %v2181_v51  ;;  %v98_v59 = vld [vmem:[%s2578_s4] sm:$0x7] }
  0x2e   :  { %277 = vmatprep.subr.bf16.mxu0 %v1848_v15  ;;  %v103_v63 = vrot.slane %v98_v59, %v102_v58  ;;  %v107_v3 = vrot.slane %v98_v59, %v106_v61  ;;  %v2244_v7 = vrot.slane %v98_v59, %v110_v1 }
  0x30   :  { %1651 = vmatpush3.bf16.msra.mxu1 %v1872_v19 }
  0x31   :  { %278 = vmatpush1.bf16.msra.mxu0 %v1850_v17  ;;  %1652 = vmatprep.subr.bf16.mxu1 %v1876_v22 }
  0x32   :  { %279 = vmatprep.subr.bf16.mxu0 %v1851_v18 }
  0x34   :  { %1653 = vmatpush3.bf16.msra.mxu1 %v1876_v22 }
  0x35   :  { %280 = vmatpush1.bf16.msra.mxu0 %v1853_v20  ;;  %1654 = vmatprep.subr.bf16.mxu1 %v1881_v25 }
  0x36   :  { %281 = vmatprep.subr.bf16.mxu0 %v1855_v21 }
  0x38   :  { %1655 = vmatpush3.bf16.msra.mxu1 %v1881_v25 }
  0x39   :  { %282 = vmatpush1.bf16.msra.mxu0 %v1857_v23  ;;  %1656 = vmatprep.subr.bf16.mxu1 %v1885_v28 }
  0x3a   :  { %601 = vmatprep.subr.bf16.mxu0 %v2098_v24 }
  0x3c   :  { %300 = vmatmul.mubr.bf16.vlgmr.msra.gmra.mxu0 %v1859_v12  ;;  %1657 = vmatpush3.bf16.msra.mxu1 %v1885_v28 }
  0x3d   :  { %602 = vmatpush1.bf16.msra.mxu0 %v2100_v26  ;;  %309 = vmatprep.mubr.bf16.mxu0 %v2581_v0 }
  0x3e   :  { %603 = vmatprep.subr.bf16.mxu0 %v2103_v27  ;;  %1666 = vmatprep.subr.bf16.mxu1 %v2583_v35 }
  0x3f   :  { %1659 = vmatmul.mubr.bf16.vlgmr.msra.gmra.mxu1 %v1868_v31 }
  0x40   :  { %1667 = vmatpush3.bf16.msra.mxu1 %v2121_v34  ;;  %1662 = vmatprep.mubr.bf16.mxu1 %v1877_v37 }
  0x41   :  { %604 = vmatpush1.bf16.msra.mxu0 %v2106_v29  ;;  %1668 = vmatprep.subr.bf16.mxu1 %v2583_v35 }
  0x42   :  { %605 = vmatprep.subr.bf16.mxu0 %v2110_v30 }
  0x44   :  { %310 = vmatmul.mubr.bf16.gmra.mxu0 %v1868_v31  ;;  %1669 = vmatpush3.bf16.msra.mxu1 %v2135_v39 }
  0x45   :  { %606 = vmatpush1.bf16.msra.mxu0 %v2116_v32  ;;  %319 = vmatprep.mubr.bf16.mxu0 %v2581_v0 }
  0x46   :  { %607 = vmatprep.subr.bf16.mxu0 %v2119_v33  ;;  %1670 = vmatprep.subr.bf16.mxu1 %v2583_v35 }
  0x47   :  { %1663 = vmatmul.mubr.bf16.gmra.mxu1 %v1886_v43 }
  0x48   :  { %1671 = vmatpush3.bf16.msra.mxu1 %v2145_v42  ;;  %1682 = vmatprep.mubr.msk.bf16.mxu1 %vm2052_vm0, %v2583_v35 }
  0x49   :  { %608 = vmatpush1.bf16.msra.mxu0 %v2125_v36  ;;  %1672 = vmatprep.subr.bf16.mxu1 %v2583_v35 }
  0x4a   :  { %609 = vmatprep.subr.bf16.mxu0 %v2132_v38 }
  0x4c   :  { %320 = vmatmul.mubr.bf16.gmra.mxu0 %v1877_v37  ;;  %1673 = vmatpush3.bf16.msra.mxu1 %v2159_v46 }
  0x4d   :  { %610 = vmatpush1.bf16.msra.mxu0 %v2139_v40  ;;  %329 = vmatprep.mubr.bf16.mxu0 %v2581_v0 }
  0x4e   :  { %611 = vmatprep.subr.bf16.mxu0 %v2142_v41  ;;  %1674 = vmatprep.subr.bf16.mxu1 %v2583_v35 }
  0x50   :  { %1675 = vmatpush3.bf16.msra.mxu1 %v2171_v49 }
  0x51   :  { %612 = vmatpush1.bf16.msra.mxu0 %v2152_v44  ;;  %1676 = vmatprep.subr.bf16.mxu1 %v2583_v35 }
  0x52   :  { %613 = vmatprep.subr.bf16.mxu0 %v2156_v45 }
  0x54   :  { %330 = vmatmul.mubr.bf16.gmra.mxu0 %v1886_v43  ;;  %1677 = vmatpush3.bf16.msra.mxu1 %v2185_v52 }
  0x55   :  { %614 = vmatpush1.bf16.msra.mxu0 %v2165_v47  ;;  %633 = vmatprep.mubr.bf16.mxu0 %v2581_v0 }
  0x56   :  { %615 = vmatprep.subr.bf16.mxu0 %v2168_v48  ;;  %1678 = vmatprep.subr.bf16.mxu1 %v2583_v35 }
  0x58   :  { %1679 = vmatpush3.bf16.msra.mxu1 %v2193_v54 }
  0x59   :  { %616 = vmatpush1.bf16.msra.mxu0 %v2175_v50  ;;  %1680 = vmatprep.subr.bf16.mxu1 %v2583_v35 }
  0x5a   :  { %710 = vmatprep.subr.bf16.mxu0 %v2098_v24 }
  0x5c   :  { %634 = vmatmul.mubr.bf16.vlgmr.msra.gmra.mxu0 %v472_v53  ;;  %1681 = vmatpush3.bf16.msra.mxu1 %v2200_v55 }
  0x5d   :  { %711 = vmatpush1.bf16.msra.mxu0 %v2100_v26  ;;  %742 = vmatprep.mubr.bf16.mxu0 %v2581_v0 }
  0x5e   :  { %712 = vmatprep.subr.bf16.mxu0 %v2103_v27  ;;  %1686 = vmatprep.subr.bf16.mxu1 %v2583_v35 }
  0x5f   :  { %1683 = vmatmul.mubr.bf16.vlgmr.msra.gmra.mxu1 %v472_v53 }
  0x60   :  { %1687 = vmatpush3.bf16.msra.mxu1 %v2121_v34  ;;  %1702 = vmatprep.mubr.msk.bf16.mxu1 %vm2052_vm0, %v2583_v35 }
  0x61   :  { %713 = vmatpush1.bf16.msra.mxu0 %v2106_v29  ;;  %1688 = vmatprep.subr.bf16.mxu1 %v2583_v35 }
  0x62   :  { %714 = vmatprep.subr.bf16.mxu0 %v2110_v30 }
  0x64   :  { %1689 = vmatpush3.bf16.msra.mxu1 %v2135_v39 }
  0x65   :  { %715 = vmatpush1.bf16.msra.mxu0 %v2116_v32  ;;  %1690 = vmatprep.subr.bf16.mxu1 %v2583_v35 }
  0x66   :  { %716 = vmatprep.subr.bf16.mxu0 %v2119_v33 }
  0x68   :  { %1691 = vmatpush3.bf16.msra.mxu1 %v2145_v42 }
  0x69   :  { %717 = vmatpush1.bf16.msra.mxu0 %v2125_v36  ;;  %1692 = vmatprep.subr.bf16.mxu1 %v2583_v35 }
  0x6a   :  { %718 = vmatprep.subr.bf16.mxu0 %v2132_v38 }
  0x6c   :  { %1693 = vmatpush3.bf16.msra.mxu1 %v2159_v46 }
  0x6d   :  { %719 = vmatpush1.bf16.msra.mxu0 %v2139_v40  ;;  %1694 = vmatprep.subr.bf16.mxu1 %v2583_v35 }
  0x6e   :  { %720 = vmatprep.subr.bf16.mxu0 %v2142_v41 }
  0x70   :  { %1695 = vmatpush3.bf16.msra.mxu1 %v2171_v49 }
  0x71   :  { %721 = vmatpush1.bf16.msra.mxu0 %v2152_v44  ;;  %1696 = vmatprep.subr.bf16.mxu1 %v2583_v35 }
  0x72   :  { %722 = vmatprep.subr.bf16.mxu0 %v2156_v45 }
  0x74   :  { %1697 = vmatpush3.bf16.msra.mxu1 %v2185_v52 }
  0x75   :  { %723 = vmatpush1.bf16.msra.mxu0 %v2165_v47  ;;  %1698 = vmatprep.subr.bf16.mxu1 %v2583_v35 }
  0x76   :  { %724 = vmatprep.subr.bf16.mxu0 %v2168_v48 }
  0x78   :  { %1699 = vmatpush3.bf16.msra.mxu1 %v2193_v54 }
  0x79   :  { %725 = vmatpush1.bf16.msra.mxu0 %v2175_v50  ;;  %1700 = vmatprep.subr.bf16.mxu1 %v2583_v35 }
  0x7a   :  { %820 = vmatprep.subr.bf16.mxu0 %v2098_v24 }
  0x7c   :  { %1701 = vmatpush3.bf16.msra.mxu1 %v2200_v55 }
  0x7d   :  { %1706 = vmatprep.subr.bf16.mxu1 %v2583_v35 }
  0xfc   :  { %v301_v60 = vpop.f32.mrf.mxu0 }
  0xfe   :  { %v303_v62 = vpop.f32.mrf.mxu0 }
  0xff   :  { %v1660_v11 = vpop.f32.mrf.mxu1 }
 0x100   :  { %v305_v2 = vpop.f32.mrf.mxu0  ;;  %v2251_v13 = vadd.f32 %v1660_v11, %v2244_v7 }
 0x101   :  { %v2240_v4 = vadd.f32 %v305_v2, %v103_v63  ;;  %v374_v15 = vpop.f32.mrf.mxu1 }
 0x102   :  { %v307_v5 = vpop.f32.mrf.mxu0 }
 0x103   :  { %v2242_v6 = vadd.f32 %v307_v5, %v107_v3  ;;  %v1661_v18 = vpop.f32.mrf.mxu1 }
 0x104   :  { %v311_v8 = vpop.f32.mrf.mxu0  ;;  %v2258_v20 = vadd.f32 %v1661_v18, %v2244_v7 }
 0x105   :  { %v2246_v9 = vadd.f32 %v311_v8, %v103_v63  ;;  %v377_v22 = vpop.f32.mrf.mxu1 }
 0x106   :  { %v313_v10 = vpop.f32.mrf.mxu0  ;;  %v2263_v25 = vadd.f32 %v377_v22, %v2244_v7 }
 0x107   :  { %v2248_v12 = vadd.f32 %v313_v10, %v107_v3  ;;  %v1664_v31 = vpop.f32.mrf.mxu1 }
 0x108   :  { %v315_v14 = vpop.f32.mrf.mxu0  ;;  %v2268_v43 = vadd.f32 %v1664_v31, %v2244_v7 }
 0x109   :  { %v2253_v16 = vadd.f32 %v315_v14, %v103_v63  ;;  %v390_v56 = vpop.f32.mrf.mxu1 }
 0x10a   :  { %v317_v17 = vpop.f32.mrf.mxu0  ;;  %2585 = vst [vmem:[#allocation10_spill] sm:$0xff] %v2268_v43  ;;  %v2273_v58 = vadd.f32 %v390_v56, %v2244_v7 }
 0x10b   :  { %v2255_v19 = vadd.f32 %v317_v17, %v107_v3  ;;  %v1665_v61 = vpop.f32.mrf.mxu1 }
 0x10c   :  { %v321_v21 = vpop.f32.mrf.mxu0  ;;  %v2278_v2 = vadd.f32 %v1665_v61, %v2244_v7 }
 0x10d   :  { %v2260_v23 = vadd.f32 %v321_v21, %v103_v63  ;;  %v393_v8 = vpop.f32.mrf.mxu1 }
 0x10e   :  { %v323_v28 = vpop.f32.mrf.mxu0  ;;  %2586 = vst [vmem:[#allocation11_spill] sm:$0xff] %v2278_v2  ;;  %v2283_v11 = vadd.f32 %v393_v8, %v2244_v7 }
 0x10f   :  { %v2265_v37 = vadd.f32 %v323_v28, %v107_v3  ;;  %v302_v28 = vadd.f32 %v301_v60, %v103_v63 }
 0x110   :  { %v325_v53 = vpop.f32.mrf.mxu0 }
 0x111   :  { %v2270_v57 = vadd.f32 %v325_v53, %v103_v63 }
 0x112   :  { %v327_v59 = vpop.f32.mrf.mxu0 }
 0x113   :  { %v2275_v1 = vadd.f32 %v327_v59, %v107_v3 }
 0x114   :  { %v331_v5 = vpop.f32.mrf.mxu0 }
 0x115   :  { %v2280_v10 = vadd.f32 %v331_v5, %v103_v63  ;;  %v304_v5 = vadd.f32 %v303_v62, %v107_v3 }
 0x116   :  { %v333_v14 = vpop.f32.mrf.mxu0 }
 0x117   :  { %2587 = vst [vmem:[#allocation12_spill] sm:$0xff] %v2280_v10  ;;  %v2285_v17 = vadd.f32 %v333_v14, %v107_v3 }
 0x118   :  { %v335_v18 = vpop.f32.mrf.mxu0 }
 0x119   :  { %2588 = vst [vmem:[#allocation13_spill] sm:$0xff] %v2285_v17  ;;  %v2287_v21 = vadd.f32 %v335_v18, %v103_v63  ;;  %v2294_v63 = vld [vmem:[%s2579_s5] ss:$0 sm:$0xff] }
 0x11a   :  { %v337_v22 = vpop.f32.mrf.mxu0 }
 0x11b   :  { %2589 = vst [vmem:[#allocation14_spill] sm:$0xff] %v2287_v21  ;;  %v2289_v31 = vadd.f32 %v337_v22, %v107_v3  ;;  %v375_v3 = vadd.f32 %v374_v15, %v2244_v7  ;;  %v2590_v15 = vmov 0.0  }
 0x11c   :  { %v635_v53 = vpop.f32.mrf.mxu0 }
 0x11d   :  { %v682_v56 = vadd.f32 %v635_v53, %v302_v28 }
 0x11e   :  { %v637_v59 = vpop.f32.mrf.mxu0 }
 0x11f   :  { %v1535_v61 = vmul.f32 -1.442695, %v682_v56  ;;  %v683_v8 = vadd.f32 %v637_v59, %v304_v5  ;;  %v676_v2 = vpop.f32.mrf.mxu1 }
 0x120   :  { %v639_v0 = vpop.f32.mrf.mxu0  ;;  %v696_v62 = vadd.f32 %v2294_v63, %v676_v2 }
 0x121   :  { %1901 = vpow2.f32 %v1535_v61  ;;  %v1536_v43 = vmul.f32 -1.442695, %v683_v8  ;;  %v1684_v14 = vpop.f32.mrf.mxu1 }
 0x122   :  { %v640_v35 = vpop.f32.mrf.mxu0 }
 0x123   :  { %v679_v17 = vpop.f32.mrf.mxu1  ;;  %1903 = vpow2.f32 %v1536_v43 }
 0x125   :  { %v1685_v18 = vpop.f32.mrf.mxu1 }
 0x12e   :  { %v1902_v21 = vpop.eup %1901 }
 0x12f   :  { %v690_v10 = vadd.f32 1.0, %v1902_v21 }
 0x130   :  { %v1904_v60 = vpop.eup %1903 }
 0x131   :  { %1905 = vrcp.f32 %v690_v10  ;;  %v691_v0 = vadd.f32 1.0, %v1904_v60 }
 0x133   :  { %1907 = vrcp.f32 %v691_v0 }
 0x13e   :  { %v1906_v35 = vpop.eup %1905 }
 0x13f   :  { %v697_v22 = vmul.f32 %v1906_v35, %v696_v62 }
 0x140   :  { %v1908_v43 = vpop.eup %1907 }
 0x141   :  { %v698_v17 = vadd.f32 %v697_v22, %v375_v3  ;;  %v700_v28 = vsub.f32 1.0, %v1908_v43  ;;  %v702_v53 = vmul.f32 %v1908_v43, %v2181_v51  ;;  %v2591_v51 = vmov 0  }
 0x143   :  { %1909 = vtanh.f32 %v698_v17 }
 0x150   :  { %v1910_v21 = vpop.eup %1909 }
 0x151   :  { %v701_v10 = vmul.f32 %v1910_v21, %v700_v28 }
 0x153   :  { %v2299_v56 = vadd.f32 %v702_v53, %v701_v10 }
 0x155   :  { %704 = vst [vmem:[%s2580_s6] sm:$0xff] %v2299_v56  ;;  %v709_v7 = vpack.c.bf16 %v2299_v56, %v2299_v56 }
 0x157   :  { %743 = vmatmul.mubr.bf16.vlgmr.msra.gmra.mxu0 %v709_v7  ;;  %1703 = vmatmul.mubr.bf16.vlgmr.msra.gmra.mxu1 %v709_v7 }
 0x158   :  { %821 = vmatpush1.bf16.msra.mxu0 %v2100_v26  ;;  %1707 = vmatpush3.bf16.msra.mxu1 %v2121_v34 }
 0x159   :  { %822 = vmatprep.subr.bf16.mxu0 %v2103_v27  ;;  %1708 = vmatprep.subr.bf16.mxu1 %v2590_v15 }
 0x15a   :  { %852 = vmatprep.mubr.bf16.mxu0 %v2591_v51  ;;  %1722 = vmatprep.mubr.msk.bf16.mxu1 %vm2052_vm0, %v2590_v15 }
 0x15c   :  { %823 = vmatpush1.bf16.msra.mxu0 %v2106_v29  ;;  %1709 = vmatpush3.bf16.msra.mxu1 %v2135_v39 }
 0x15d   :  { %824 = vmatprep.subr.bf16.mxu0 %v2110_v30  ;;  %1710 = vmatprep.subr.bf16.mxu1 %v2590_v15 }
 0x160   :  { %825 = vmatpush1.bf16.msra.mxu0 %v2116_v32  ;;  %1711 = vmatpush3.bf16.msra.mxu1 %v2145_v42 }
 0x161   :  { %826 = vmatprep.subr.bf16.mxu0 %v2119_v33  ;;  %1712 = vmatprep.subr.bf16.mxu1 %v2590_v15 }
 0x164   :  { %827 = vmatpush1.bf16.msra.mxu0 %v2125_v36  ;;  %1713 = vmatpush3.bf16.msra.mxu1 %v2159_v46 }
 0x165   :  { %828 = vmatprep.subr.bf16.mxu0 %v2132_v38  ;;  %1714 = vmatprep.subr.bf16.mxu1 %v2590_v15 }
 0x168   :  { %829 = vmatpush1.bf16.msra.mxu0 %v2139_v40  ;;  %1715 = vmatpush3.bf16.msra.mxu1 %v2171_v49 }
 0x169   :  { %830 = vmatprep.subr.bf16.mxu0 %v2142_v41  ;;  %1716 = vmatprep.subr.bf16.mxu1 %v2590_v15 }
 0x16c   :  { %831 = vmatpush1.bf16.msra.mxu0 %v2152_v44  ;;  %1717 = vmatpush3.bf16.msra.mxu1 %v2185_v52 }
 0x16d   :  { %832 = vmatprep.subr.bf16.mxu0 %v2156_v45  ;;  %1718 = vmatprep.subr.bf16.mxu1 %v2590_v15 }
 0x170   :  { %833 = vmatpush1.bf16.msra.mxu0 %v2165_v47  ;;  %1719 = vmatpush3.bf16.msra.mxu1 %v2193_v54 }
 0x171   :  { %834 = vmatprep.subr.bf16.mxu0 %v2168_v48  ;;  %1720 = vmatprep.subr.bf16.mxu1 %v2590_v15 }
 0x174   :  { %835 = vmatpush1.bf16.msra.mxu0 %v2175_v50  ;;  %1721 = vmatpush3.bf16.msra.mxu1 %v2200_v55 }
 0x175   :  { %930 = vmatprep.subr.bf16.mxu0 %v2098_v24  ;;  %1726 = vmatprep.subr.bf16.mxu1 %v2590_v15 }
 0x217   :  { %v744_v2 = vpop.f32.mrf.mxu0  ;;  %v785_v59 = vpop.f32.mrf.mxu1 }
 0x218   :  { %v791_v61 = vadd.f32 %v744_v2, %v2240_v4  ;;  %v805_v21 = vadd.f32 %v2294_v63, %v785_v59 }
 0x219   :  { %v746_v5 = vpop.f32.mrf.mxu0  ;;  %v1704_v8 = vpop.f32.mrf.mxu1 }
 0x21a   :  { %v1537_v14 = vmul.f32 -1.442695, %v791_v61  ;;  %v792_v35 = vadd.f32 %v746_v5, %v2242_v6 }
 0x21b   :  { %v748_v18 = vpop.f32.mrf.mxu0  ;;  %v788_v60 = vpop.f32.mrf.mxu1 }
 0x21c   :  { %1911 = vpow2.f32 %v1537_v14  ;;  %v1538_v3 = vmul.f32 -1.442695, %v792_v35 }
 0x21d   :  { %v749_v0 = vpop.f32.mrf.mxu0  ;;  %v1705_v62 = vpop.f32.mrf.mxu1 }
 0x21e   :  { %1913 = vpow2.f32 %v1538_v3 }
 0x229   :  { %v1912_v22 = vpop.eup %1911 }
 0x22a   :  { %v799_v17 = vadd.f32 1.0, %v1912_v22 }
 0x22b   :  { %v1914_v43 = vpop.eup %1913 }
 0x22c   :  { %1915 = vrcp.f32 %v799_v17  ;;  %v800_v28 = vadd.f32 1.0, %v1914_v43 }
 0x22e   :  { %1917 = vrcp.f32 %v800_v28 }
 0x239   :  { %v1916_v4 = vpop.eup %1915 }
 0x23a   :  { %v806_v10 = vmul.f32 %v1916_v4, %v805_v21 }
 0x23b   :  { %v1918_v7 = vpop.eup %1917 }
 0x23c   :  { %v807_v53 = vadd.f32 %v806_v10, %v2263_v25  ;;  %v809_v2 = vsub.f32 1.0, %v1918_v7  ;;  %v811_v6 = vmul.f32 %v1918_v7, %v2299_v56 }
 0x23e   :  { %1919 = vtanh.f32 %v807_v53 }
 0x24b   :  { %v1920_v61 = vpop.eup %1919 }
 0x24c   :  { %v810_v8 = vmul.f32 %v1920_v61, %v809_v2 }
 0x24e   :  { %v2347_v5 = vadd.f32 %v811_v6, %v810_v8 }
 0x250   :  { %1539 = vst [vmem:[%s2580_s6 + $0x8] sm:$0xff] %v2347_v5  ;;  %v819_v59 = vpack.c.bf16 %v2347_v5, %v2347_v5 }
 0x252   :  { %853 = vmatmul.mubr.bf16.vlgmr.msra.gmra.mxu0 %v819_v59  ;;  %1723 = vmatmul.mubr.bf16.vlgmr.msra.gmra.mxu1 %v819_v59 }
 0x253   :  { %931 = vmatpush1.bf16.msra.mxu0 %v2100_v26  ;;  %1727 = vmatpush3.bf16.msra.mxu1 %v2121_v34 }
 0x254   :  { %932 = vmatprep.subr.bf16.mxu0 %v2103_v27  ;;  %1728 = vmatprep.subr.bf16.mxu1 %v2590_v15 }
 0x255   :  { %962 = vmatprep.mubr.bf16.mxu0 %v2591_v51  ;;  %1742 = vmatprep.mubr.msk.bf16.mxu1 %vm2052_vm0, %v2590_v15 }
 0x257   :  { %933 = vmatpush1.bf16.msra.mxu0 %v2106_v29  ;;  %1729 = vmatpush3.bf16.msra.mxu1 %v2135_v39 }
 0x258   :  { %934 = vmatprep.subr.bf16.mxu0 %v2110_v30  ;;  %1730 = vmatprep.subr.bf16.mxu1 %v2590_v15 }
 0x25b   :  { %935 = vmatpush1.bf16.msra.mxu0 %v2116_v32  ;;  %1731 = vmatpush3.bf16.msra.mxu1 %v2145_v42 }
 0x25c   :  { %936 = vmatprep.subr.bf16.mxu0 %v2119_v33  ;;  %1732 = vmatprep.subr.bf16.mxu1 %v2590_v15 }
 0x25f   :  { %937 = vmatpush1.bf16.msra.mxu0 %v2125_v36  ;;  %1733 = vmatpush3.bf16.msra.mxu1 %v2159_v46 }
 0x260   :  { %938 = vmatprep.subr.bf16.mxu0 %v2132_v38  ;;  %1734 = vmatprep.subr.bf16.mxu1 %v2590_v15 }
 0x263   :  { %939 = vmatpush1.bf16.msra.mxu0 %v2139_v40  ;;  %1735 = vmatpush3.bf16.msra.mxu1 %v2171_v49 }
 0x264   :  { %940 = vmatprep.subr.bf16.mxu0 %v2142_v41  ;;  %1736 = vmatprep.subr.bf16.mxu1 %v2590_v15 }
 0x267   :  { %941 = vmatpush1.bf16.msra.mxu0 %v2152_v44  ;;  %1737 = vmatpush3.bf16.msra.mxu1 %v2185_v52 }
 0x268   :  { %942 = vmatprep.subr.bf16.mxu0 %v2156_v45  ;;  %1738 = vmatprep.subr.bf16.mxu1 %v2590_v15 }
 0x26b   :  { %943 = vmatpush1.bf16.msra.mxu0 %v2165_v47  ;;  %1739 = vmatpush3.bf16.msra.mxu1 %v2193_v54 }
 0x26c   :  { %944 = vmatprep.subr.bf16.mxu0 %v2168_v48  ;;  %1740 = vmatprep.subr.bf16.mxu1 %v2590_v15 }
 0x26f   :  { %945 = vmatpush1.bf16.msra.mxu0 %v2175_v50  ;;  %1741 = vmatpush3.bf16.msra.mxu1 %v2200_v55 }
 0x270   :  { %1040 = vmatprep.subr.bf16.mxu0 %v2098_v24  ;;  %1746 = vmatprep.subr.bf16.mxu1 %v2590_v15 }
 0x312   :  { %v854_v25 = vpop.f32.mrf.mxu0  ;;  %v895_v56 = vpop.f32.mrf.mxu1 }
 0x313   :  { %v901_v14 = vadd.f32 %v854_v25, %v2246_v9  ;;  %v915_v53 = vadd.f32 %v2294_v63, %v895_v56 }
 0x314   :  { %v856_v18 = vpop.f32.mrf.mxu0  ;;  %v1724_v60 = vpop.f32.mrf.mxu1 }
 0x315   :  { %v1540_v0 = vmul.f32 -1.442695, %v901_v14  ;;  %v902_v17 = vadd.f32 %v856_v18, %v2248_v12 }
 0x316   :  { %v858_v62 = vpop.f32.mrf.mxu0  ;;  %v898_v35 = vpop.f32.mrf.mxu1 }
 0x317   :  { %1921 = vpow2.f32 %v1540_v0  ;;  %v1541_v43 = vmul.f32 -1.442695, %v902_v17 }
 0x318   :  { %v859_v3 = vpop.f32.mrf.mxu0  ;;  %v1725_v22 = vpop.f32.mrf.mxu1 }
 0x319   :  { %1923 = vpow2.f32 %v1541_v43 }
 0x324   :  { %v1922_v28 = vpop.eup %1921 }
 0x325   :  { %v909_v21 = vadd.f32 1.0, %v1922_v28 }
 0x326   :  { %v1924_v4 = vpop.eup %1923 }
 0x327   :  { %1925 = vrcp.f32 %v909_v21  ;;  %v910_v10 = vadd.f32 1.0, %v1924_v4 }
 0x329   :  { %1927 = vrcp.f32 %v910_v10 }
 0x334   :  { %v1926_v9 = vpop.eup %1925 }
 0x335   :  { %v916_v7 = vmul.f32 %v1926_v9, %v915_v53 }
 0x336   :  { %v1928_v61 = vpop.eup %1927 }
 0x337   :  { %v917_v2 = vadd.f32 %v916_v7, %v2251_v13  ;;  %v919_v8 = vsub.f32 1.0, %v1928_v61  ;;  %v921_v12 = vmul.f32 %v1928_v61, %v2347_v5 }
 0x339   :  { %1929 = vtanh.f32 %v917_v2 }
 0x346   :  { %v1930_v6 = vpop.eup %1929 }
 0x347   :  { %v920_v59 = vmul.f32 %v1930_v6, %v919_v8 }
 0x349   :  { %v2395_v25 = vadd.f32 %v921_v12, %v920_v59 }
 0x34b   :  { %1542 = vst [vmem:[%s2580_s6 + $0x10] sm:$0xff] %v2395_v25  ;;  %v929_v56 = vpack.c.bf16 %v2395_v25, %v2395_v25 }
 0x34d   :  { %963 = vmatmul.mubr.bf16.vlgmr.msra.gmra.mxu0 %v929_v56  ;;  %1743 = vmatmul.mubr.bf16.vlgmr.msra.gmra.mxu1 %v929_v56 }
 0x34e   :  { %1041 = vmatpush1.bf16.msra.mxu0 %v2100_v26  ;;  %1747 = vmatpush3.bf16.msra.mxu1 %v2121_v34 }
 0x34f   :  { %1042 = vmatprep.subr.bf16.mxu0 %v2103_v27  ;;  %1748 = vmatprep.subr.bf16.mxu1 %v2590_v15 }
 0x350   :  { %1072 = vmatprep.mubr.bf16.mxu0 %v2591_v51  ;;  %1762 = vmatprep.mubr.msk.bf16.mxu1 %vm2052_vm0, %v2590_v15 }
 0x352   :  { %1043 = vmatpush1.bf16.msra.mxu0 %v2106_v29  ;;  %1749 = vmatpush3.bf16.msra.mxu1 %v2135_v39 }
 0x353   :  { %1044 = vmatprep.subr.bf16.mxu0 %v2110_v30  ;;  %1750 = vmatprep.subr.bf16.mxu1 %v2590_v15 }
 0x356   :  { %1045 = vmatpush1.bf16.msra.mxu0 %v2116_v32  ;;  %1751 = vmatpush3.bf16.msra.mxu1 %v2145_v42 }
 0x357   :  { %1046 = vmatprep.subr.bf16.mxu0 %v2119_v33  ;;  %1752 = vmatprep.subr.bf16.mxu1 %v2590_v15 }
 0x35a   :  { %1047 = vmatpush1.bf16.msra.mxu0 %v2125_v36  ;;  %1753 = vmatpush3.bf16.msra.mxu1 %v2159_v46 }
 0x35b   :  { %1048 = vmatprep.subr.bf16.mxu0 %v2132_v38  ;;  %1754 = vmatprep.subr.bf16.mxu1 %v2590_v15 }
 0x35e   :  { %1049 = vmatpush1.bf16.msra.mxu0 %v2139_v40  ;;  %1755 = vmatpush3.bf16.msra.mxu1 %v2171_v49 }
 0x35f   :  { %1050 = vmatprep.subr.bf16.mxu0 %v2142_v41  ;;  %1756 = vmatprep.subr.bf16.mxu1 %v2590_v15 }
 0x362   :  { %1051 = vmatpush1.bf16.msra.mxu0 %v2152_v44  ;;  %1757 = vmatpush3.bf16.msra.mxu1 %v2185_v52 }
 0x363   :  { %1052 = vmatprep.subr.bf16.mxu0 %v2156_v45  ;;  %1758 = vmatprep.subr.bf16.mxu1 %v2590_v15 }
 0x366   :  { %1053 = vmatpush1.bf16.msra.mxu0 %v2165_v47  ;;  %1759 = vmatpush3.bf16.msra.mxu1 %v2193_v54 }
 0x367   :  { %1054 = vmatprep.subr.bf16.mxu0 %v2168_v48  ;;  %1760 = vmatprep.subr.bf16.mxu1 %v2590_v15 }
 0x36a   :  { %1055 = vmatpush1.bf16.msra.mxu0 %v2175_v50  ;;  %1761 = vmatpush3.bf16.msra.mxu1 %v2200_v55 }
 0x36b   :  { %1150 = vmatprep.subr.bf16.mxu0 %v2098_v24  ;;  %1766 = vmatprep.subr.bf16.mxu1 %v2590_v15 }
 0x40d   :  { %v964_v13 = vpop.f32.mrf.mxu0  ;;  %v1005_v5 = vpop.f32.mrf.mxu1 }
 0x40e   :  { %v1011_v14 = vadd.f32 %v964_v13, %v2253_v16  ;;  %v1025_v53 = vadd.f32 %v2294_v63, %v1005_v5 }
 0x40f   :  { %v966_v18 = vpop.f32.mrf.mxu0  ;;  %v1744_v60 = vpop.f32.mrf.mxu1 }
 0x410   :  { %v1543_v0 = vmul.f32 -1.442695, %v1011_v14  ;;  %v1012_v17 = vadd.f32 %v966_v18, %v2255_v19 }
 0x411   :  { %v968_v62 = vpop.f32.mrf.mxu0  ;;  %v1008_v35 = vpop.f32.mrf.mxu1 }
 0x412   :  { %1931 = vpow2.f32 %v1543_v0  ;;  %v1544_v43 = vmul.f32 -1.442695, %v1012_v17 }
 0x413   :  { %v969_v3 = vpop.f32.mrf.mxu0  ;;  %v1745_v22 = vpop.f32.mrf.mxu1 }
 0x414   :  { %1933 = vpow2.f32 %v1544_v43 }
 0x41f   :  { %v1932_v28 = vpop.eup %1931 }
 0x420   :  { %v1019_v21 = vadd.f32 1.0, %v1932_v28 }
 0x421   :  { %v1934_v4 = vpop.eup %1933 }
 0x422   :  { %1935 = vrcp.f32 %v1019_v21  ;;  %v1020_v10 = vadd.f32 1.0, %v1934_v4 }
 0x424   :  { %1937 = vrcp.f32 %v1020_v10 }
 0x42f   :  { %v1936_v16 = vpop.eup %1935 }
 0x430   :  { %v1026_v9 = vmul.f32 %v1936_v16, %v1025_v53 }
 0x431   :  { %v1938_v2 = vpop.eup %1937 }
 0x432   :  { %v1027_v7 = vadd.f32 %v1026_v9, %v2258_v20  ;;  %v1029_v61 = vsub.f32 1.0, %v1938_v2  ;;  %v1031_v19 = vmul.f32 %v1938_v2, %v2395_v25 }
 0x434   :  { %1939 = vtanh.f32 %v1027_v7 }
 0x441   :  { %v1940_v8 = vpop.eup %1939 }
 0x442   :  { %v1030_v6 = vmul.f32 %v1940_v8, %v1029_v61 }
 0x444   :  { %v2443_v59 = vadd.f32 %v1031_v19, %v1030_v6 }
 0x446   :  { %1545 = vst [vmem:[%s2580_s6 + $0x18] sm:$0xff] %v2443_v59  ;;  %v1039_v12 = vpack.c.bf16 %v2443_v59, %v2443_v59 }
 0x448   :  { %1073 = vmatmul.mubr.bf16.vlgmr.msra.gmra.mxu0 %v1039_v12  ;;  %1763 = vmatmul.mubr.bf16.vlgmr.msra.gmra.mxu1 %v1039_v12  ;;  %v1983_v12 = vld [vmem:[#allocation6 + $0xb0] ss:$12 sps:$4 sm:$0xff]  }
 0x449   :  { %1151 = vmatpush1.bf16.msra.mxu0 %v2100_v26  ;;  %1767 = vmatpush3.bf16.msra.mxu1 %v2121_v34 }
 0x44a   :  { %1152 = vmatprep.subr.bf16.mxu0 %v2103_v27  ;;  %1768 = vmatprep.subr.bf16.mxu1 %v2590_v15 }
 0x44b   :  { %1182 = vmatprep.mubr.bf16.mxu0 %v2591_v51  ;;  %1782 = vmatprep.mubr.msk.bf16.mxu1 %vm2052_vm0, %v2590_v15 }
 0x44d   :  { %1153 = vmatpush1.bf16.msra.mxu0 %v2106_v29  ;;  %1769 = vmatpush3.bf16.msra.mxu1 %v2135_v39 }
 0x44e   :  { %1154 = vmatprep.subr.bf16.mxu0 %v2110_v30  ;;  %1770 = vmatprep.subr.bf16.mxu1 %v2590_v15 }
 0x451   :  { %1155 = vmatpush1.bf16.msra.mxu0 %v2116_v32  ;;  %1771 = vmatpush3.bf16.msra.mxu1 %v2145_v42 }
 0x452   :  { %1156 = vmatprep.subr.bf16.mxu0 %v2119_v33  ;;  %1772 = vmatprep.subr.bf16.mxu1 %v2590_v15 }
 0x455   :  { %1157 = vmatpush1.bf16.msra.mxu0 %v2125_v36  ;;  %1773 = vmatpush3.bf16.msra.mxu1 %v2159_v46 }
 0x456   :  { %1158 = vmatprep.subr.bf16.mxu0 %v2132_v38  ;;  %1774 = vmatprep.subr.bf16.mxu1 %v2590_v15 }
 0x459   :  { %1159 = vmatpush1.bf16.msra.mxu0 %v2139_v40  ;;  %1775 = vmatpush3.bf16.msra.mxu1 %v2171_v49 }
 0x45a   :  { %1160 = vmatprep.subr.bf16.mxu0 %v2142_v41  ;;  %1776 = vmatprep.subr.bf16.mxu1 %v2590_v15 }
 0x45d   :  { %1161 = vmatpush1.bf16.msra.mxu0 %v2152_v44  ;;  %1777 = vmatpush3.bf16.msra.mxu1 %v2185_v52 }
 0x45e   :  { %1162 = vmatprep.subr.bf16.mxu0 %v2156_v45  ;;  %1778 = vmatprep.subr.bf16.mxu1 %v2590_v15 }
 0x461   :  { %1163 = vmatpush1.bf16.msra.mxu0 %v2165_v47  ;;  %1779 = vmatpush3.bf16.msra.mxu1 %v2193_v54 }
 0x462   :  { %1164 = vmatprep.subr.bf16.mxu0 %v2168_v48  ;;  %1780 = vmatprep.subr.bf16.mxu1 %v2590_v15 }
 0x465   :  { %1165 = vmatpush1.bf16.msra.mxu0 %v2175_v50  ;;  %1781 = vmatpush3.bf16.msra.mxu1 %v2200_v55 }
 0x466   :  { %1260 = vmatprep.subr.bf16.mxu0 %v2098_v24  ;;  %1786 = vmatprep.subr.bf16.mxu1 %v2590_v15 }
 0x508   :  { %v1074_v20 = vpop.f32.mrf.mxu0  ;;  %v1115_v25 = vpop.f32.mrf.mxu1 }
 0x509   :  { %v1121_v56 = vadd.f32 %v1074_v20, %v2260_v23  ;;  %v1135_v28 = vadd.f32 %v2294_v63, %v1115_v25  ;;  %v1984_v20 = vld [vmem:[#allocation6 + $0x94] ss:$12 sps:$4 sm:$0xff]   ;;  %v1985_v25 = vld [vmem:[#allocation6 + $0x90] ss:$12 sps:$4 sm:$0xff]  }
 0x50a   :  { %v1076_v13 = vpop.f32.mrf.mxu0  ;;  %v1764_v5 = vpop.f32.mrf.mxu1 }
 0x50b   :  { %v1546_v14 = vmul.f32 -1.442695, %v1121_v56  ;;  %v1122_v35 = vadd.f32 %v1076_v13, %v2265_v37  ;;  %v1986_v56 = vld [vmem:[#allocation6 + $0x98] ss:$12 sps:$4 sm:$0xff]   ;;  %v1987_v13 = vld [vmem:[#allocation6 + $0x7c] ss:$12 sps:$4 sm:$0xff]  }
 0x50c   :  { %v1078_v18 = vpop.f32.mrf.mxu0  ;;  %v1118_v60 = vpop.f32.mrf.mxu1  ;;  %v1988_v5 = vld [vmem:[#allocation6 + $0x78] ss:$12 sps:$4 sm:$0xff]  }
 0x50d   :  { %1941 = vpow2.f32 %v1546_v14  ;;  %v1547_v3 = vmul.f32 -1.442695, %v1122_v35  ;;  %v1989_v14 = vld [vmem:[#allocation6 + $0x80] ss:$12 sps:$4 sm:$0xff]   ;;  %v1990_v18 = vld [vmem:[#allocation6 + $0x64] ss:$12 sps:$4 sm:$0xff]  }
 0x50e   :  { %v1079_v0 = vpop.f32.mrf.mxu0  ;;  %v1765_v62 = vpop.f32.mrf.mxu1  ;;  %v1992_v60 = vld [vmem:[#allocation6 + $0x68] ss:$12 sps:$4 sm:$0xff]   ;;  %v1995_v35 = vld [vmem:[#allocation6 + $0x50] ss:$12 sps:$4 sm:$0xff]  }
 0x50f   :  { %1943 = vpow2.f32 %v1547_v3  ;;  %v1993_v0 = vld [vmem:[#allocation6 + $0x4c] ss:$12 sps:$4 sm:$0xff]   ;;  %v1994_v62 = vld [vmem:[#allocation6 + $0x48] ss:$12 sps:$4 sm:$0xff]  }
 0x510   :  { %v1996_v3 = vld [vmem:[#allocation6 + $0x34] ss:$12 sps:$4 sm:$0xff]  }
 0x51a   :  { %v1942_v22 = vpop.eup %1941 }
 0x51b   :  { %v1129_v24 = vadd.f32 1.0, %v1942_v22  ;;  %v1997_v22 = vld [vmem:[#allocation6 + $0x30] ss:$12 sps:$4 sm:$0xff]  }
 0x51c   :  { %v1944_v17 = vpop.eup %1943 }
 0x51d   :  { %1945 = vrcp.f32 %v1129_v24  ;;  %v1130_v43 = vadd.f32 1.0, %v1944_v17  ;;  %v1998_v24 = vld [vmem:[#allocation6 + $0x1c] ss:$12 sps:$4 sm:$0xff]   ;;  %v1999_v17 = vld [vmem:[#allocation6 + $0x18] ss:$12 sps:$4 sm:$0xff]  }
 0x51f   :  { %1947 = vrcp.f32 %v1130_v43  ;;  %v2000_v43 = vld [vmem:[#allocation6 + $0x4] ss:$12 sps:$4 sm:$0xff]  }
 0x52a   :  { %v1946_v23 = vpop.eup %1945 }
 0x52b   :  { %v1136_v21 = vmul.f32 %v1946_v23, %v1135_v28  ;;  %v2001_v28 = vld [vmem:[#allocation6] ss:$12 sps:$4 sm:$0xff]  }
 0x52c   :  { %v1948_v10 = vpop.eup %1947 }
 0x52d   :  { %v1137_v4 = vadd.f32 %v1136_v21, %v2273_v58  ;;  %v1139_v53 = vsub.f32 1.0, %v1948_v10  ;;  %v1141_v37 = vmul.f32 %v1948_v10, %v2443_v59 }
 0x52f   :  { %1949 = vtanh.f32 %v1137_v4  ;;  %v2592_v4 = vld [vmem:[#allocation12_spill] sm:$0xff] }
 0x53c   :  { %v1950_v16 = vpop.eup %1949 }
 0x53d   :  { %v1140_v9 = vmul.f32 %v1950_v16, %v1139_v53 }
 0x53f   :  { %v2491_v7 = vadd.f32 %v1141_v37, %v1140_v9 }
 0x541   :  { %1548 = vst [vmem:[%s2580_s6 + $0x20] sm:$0xff] %v2491_v7  ;;  %v1149_v2 = vpack.c.bf16 %v2491_v7, %v2491_v7 }
 0x543   :  { %1183 = vmatmul.mubr.bf16.vlgmr.msra.gmra.mxu0 %v1149_v2  ;;  %1783 = vmatmul.mubr.bf16.vlgmr.msra.gmra.mxu1 %v1149_v2  ;;  %v2593_v2 = vld [vmem:[#allocation13_spill] sm:$0xff] }
 0x544   :  { %1261 = vmatpush1.bf16.msra.mxu0 %v2100_v26  ;;  %1787 = vmatpush3.bf16.msra.mxu1 %v2121_v34  ;;  %v1981_v26 = vld [vmem:[#allocation6 + $0xac] ss:$12 sps:$4 sm:$0xff]  }
 0x545   :  { %1262 = vmatprep.subr.bf16.mxu0 %v2103_v27  ;;  %1788 = vmatprep.subr.bf16.mxu1 %v2590_v15 }
 0x546   :  { %1292 = vmatprep.mubr.bf16.mxu0 %v2591_v51  ;;  %1802 = vmatprep.mubr.msk.bf16.mxu1 %vm2052_vm0, %v2590_v15 }
 0x548   :  { %1263 = vmatpush1.bf16.msra.mxu0 %v2106_v29  ;;  %1789 = vmatpush3.bf16.msra.mxu1 %v2135_v39 }
 0x549   :  { %1264 = vmatprep.subr.bf16.mxu0 %v2110_v30  ;;  %1790 = vmatprep.subr.bf16.mxu1 %v2590_v15 }
 0x54c   :  { %1265 = vmatpush1.bf16.msra.mxu0 %v2116_v32  ;;  %1791 = vmatpush3.bf16.msra.mxu1 %v2145_v42 }
 0x54d   :  { %1266 = vmatprep.subr.bf16.mxu0 %v2119_v33  ;;  %1792 = vmatprep.subr.bf16.mxu1 %v2590_v15 }
 0x550   :  { %1267 = vmatpush1.bf16.msra.mxu0 %v2125_v36  ;;  %1793 = vmatpush3.bf16.msra.mxu1 %v2159_v46 }
 0x551   :  { %1268 = vmatprep.subr.bf16.mxu0 %v2132_v38  ;;  %1794 = vmatprep.subr.bf16.mxu1 %v2590_v15 }
 0x554   :  { %1269 = vmatpush1.bf16.msra.mxu0 %v2139_v40  ;;  %1795 = vmatpush3.bf16.msra.mxu1 %v2171_v49 }
 0x555   :  { %1270 = vmatprep.subr.bf16.mxu0 %v2142_v41  ;;  %1796 = vmatprep.subr.bf16.mxu1 %v2590_v15 }
 0x558   :  { %1271 = vmatpush1.bf16.msra.mxu0 %v2152_v44  ;;  %1797 = vmatpush3.bf16.msra.mxu1 %v2185_v52 }
 0x559   :  { %1272 = vmatprep.subr.bf16.mxu0 %v2156_v45  ;;  %1798 = vmatprep.subr.bf16.mxu1 %v2590_v15 }
 0x55c   :  { %1273 = vmatpush1.bf16.msra.mxu0 %v2165_v47  ;;  %1799 = vmatpush3.bf16.msra.mxu1 %v2193_v54 }
 0x55d   :  { %1274 = vmatprep.subr.bf16.mxu0 %v2168_v48  ;;  %1800 = vmatprep.subr.bf16.mxu1 %v2590_v15 }
 0x560   :  { %1275 = vmatpush1.bf16.msra.mxu0 %v2175_v50  ;;  %1801 = vmatpush3.bf16.msra.mxu1 %v2200_v55 }
 0x561   :  { %1370 = vmatprep.subr.bf16.mxu0 %v1981_v26  ;;  %1806 = vmatprep.subr.bf16.mxu1 %v2590_v15 }
 0x603   :  { %v1184_v27 = vpop.f32.mrf.mxu0  ;;  %v1225_v29 = vpop.f32.mrf.mxu1 }
 0x604   :  { %v1231_v30 = vadd.f32 %v1184_v27, %v2270_v57  ;;  %v1245_v48 = vadd.f32 %v2294_v63, %v1225_v29 }
 0x605   :  { %v1186_v32 = vpop.f32.mrf.mxu0  ;;  %v1784_v33 = vpop.f32.mrf.mxu1 }
 0x606   :  { %v1549_v34 = vmul.f32 -1.442695, %v1231_v30  ;;  %v1232_v41 = vadd.f32 %v1186_v32, %v2275_v1 }
 0x607   :  { %v1188_v36 = vpop.f32.mrf.mxu0  ;;  %v1228_v38 = vpop.f32.mrf.mxu1 }
 0x608   :  { %1951 = vpow2.f32 %v1549_v34  ;;  %v1550_v42 = vmul.f32 -1.442695, %v1232_v41  ;;  %v2594_v36 = vld [vmem:[#allocation10_spill] sm:$0xff] }
 0x609   :  { %v1189_v39 = vpop.f32.mrf.mxu0  ;;  %v1785_v40 = vpop.f32.mrf.mxu1 }
 0x60a   :  { %1953 = vpow2.f32 %v1550_v42 }
 0x615   :  { %v1952_v44 = vpop.eup %1951 }
 0x616   :  { %v1239_v45 = vadd.f32 1.0, %v1952_v44 }
 0x617   :  { %v1954_v46 = vpop.eup %1953 }
 0x618   :  { %1955 = vrcp.f32 %v1239_v45  ;;  %v1240_v47 = vadd.f32 1.0, %v1954_v46 }
 0x61a   :  { %1957 = vrcp.f32 %v1240_v47 }
 0x625   :  { %v1956_v49 = vpop.eup %1955 }
 0x626   :  { %v1246_v50 = vmul.f32 %v1956_v49, %v1245_v48  ;;  %v2595_v49 = vld [vmem:[#allocation14_spill] sm:$0xff] }
 0x627   :  { %v1958_v58 = vpop.eup %1957 }
 0x628   :  { %v1247_v57 = vadd.f32 %v1246_v50, %v2283_v11  ;;  %v1249_v61 = vsub.f32 1.0, %v1958_v58  ;;  %v1251_v1 = vmul.f32 %v1958_v58, %v2491_v7  ;;  %v1982_v11 = vld [vmem:[#allocation6 + $0xa8] ss:$12 sps:$4 sm:$0xff]  }
 0x62a   :  { %1959 = vtanh.f32 %v1247_v57 }
 0x637   :  { %v1960_v8 = vpop.eup %1959 }
 0x638   :  { %v1250_v6 = vmul.f32 %v1960_v8, %v1249_v61 }
 0x63a   :  { %v2538_v19 = vadd.f32 %v1251_v1, %v1250_v6 }
 0x63c   :  { %1551 = vst [vmem:[%s2580_s6 + $0x28] sm:$0xff] %v2538_v19  ;;  %v1259_v59 = vpack.c.bf16 %v2538_v19, %v2538_v19 }
 0x63e   :  { %1293 = vmatmul.mubr.bf16.vlgmr.msra.gmra.mxu0 %v1259_v59  ;;  %1803 = vmatmul.mubr.bf16.vlgmr.msra.gmra.mxu1 %v1259_v59 }
 0x63f   :  { %1371 = vmatpush1.bf16.msra.mxu0 %v1982_v11  ;;  %1807 = vmatpush3.bf16.msra.mxu1 %v1983_v12 }
 0x640   :  { %1372 = vmatprep.subr.bf16.mxu0 %v1984_v20  ;;  %1808 = vmatprep.subr.bf16.mxu1 %v2590_v15 }
 0x641   :  { %1402 = vmatprep.mubr.bf16.mxu0 %v2591_v51  ;;  %1822 = vmatprep.mubr.msk.bf16.mxu1 %vm2052_vm0, %v2590_v15  ;;  %v1991_v51 = vld [vmem:[#allocation6 + $0x60] ss:$12 sps:$4 sm:$0xff]  }
 0x643   :  { %1373 = vmatpush1.bf16.msra.mxu0 %v1985_v25  ;;  %1809 = vmatpush3.bf16.msra.mxu1 %v1986_v56 }
 0x644   :  { %1374 = vmatprep.subr.bf16.mxu0 %v1987_v13  ;;  %1810 = vmatprep.subr.bf16.mxu1 %v2590_v15 }
 0x647   :  { %1375 = vmatpush1.bf16.msra.mxu0 %v1988_v5  ;;  %1811 = vmatpush3.bf16.msra.mxu1 %v1989_v14 }
 0x648   :  { %1376 = vmatprep.subr.bf16.mxu0 %v1990_v18  ;;  %1812 = vmatprep.subr.bf16.mxu1 %v2590_v15  ;;  %v2596_v18 = vld [vmem:[#allocation11_spill] sm:$0xff] }
 0x64b   :  { %1377 = vmatpush1.bf16.msra.mxu0 %v1991_v51  ;;  %1813 = vmatpush3.bf16.msra.mxu1 %v1992_v60 }
 0x64c   :  { %1378 = vmatprep.subr.bf16.mxu0 %v1993_v0  ;;  %1814 = vmatprep.subr.bf16.mxu1 %v2590_v15 }
 0x64f   :  { %1379 = vmatpush1.bf16.msra.mxu0 %v1994_v62  ;;  %1815 = vmatpush3.bf16.msra.mxu1 %v1995_v35 }
 0x650   :  { %1380 = vmatprep.subr.bf16.mxu0 %v1996_v3  ;;  %1816 = vmatprep.subr.bf16.mxu1 %v2590_v15 }
 0x653   :  { %1381 = vmatpush1.bf16.msra.mxu0 %v1997_v22  ;;  %1817 = vmatpush3.bf16.msra.mxu1 %v2185_v52 }
 0x654   :  { %1382 = vmatprep.subr.bf16.mxu0 %v1998_v24  ;;  %1818 = vmatprep.subr.bf16.mxu1 %v2590_v15 }
 0x657   :  { %1383 = vmatpush1.bf16.msra.mxu0 %v1999_v17  ;;  %1819 = vmatpush3.bf16.msra.mxu1 %v2193_v54 }
 0x658   :  { %1384 = vmatprep.subr.bf16.mxu0 %v2000_v43  ;;  %1820 = vmatprep.subr.bf16.mxu1 %v2590_v15 }
 0x65b   :  { %1385 = vmatpush1.bf16.msra.mxu0 %v2001_v28  ;;  %1821 = vmatpush3.bf16.msra.mxu1 %v2200_v55 }
 0x6fe   :  { %v1294_v23 = vpop.f32.mrf.mxu0  ;;  %v1335_v21 = vpop.f32.mrf.mxu1 }
 0x6ff   :  { %v1341_v52 = vadd.f32 %v1294_v23, %v2592_v4  ;;  %v1355_v32 = vadd.f32 %v2294_v63, %v1335_v21 }
 0x700   :  { %v1296_v10 = vpop.f32.mrf.mxu0  ;;  %v1804_v53 = vpop.f32.mrf.mxu1 }
 0x701   :  { %v1552_v16 = vmul.f32 -1.442695, %v1341_v52  ;;  %v1342_v26 = vadd.f32 %v1296_v10, %v2593_v2 }
 0x702   :  { %v1298_v9 = vpop.f32.mrf.mxu0  ;;  %v1338_v37 = vpop.f32.mrf.mxu1 }
 0x703   :  { %1961 = vpow2.f32 %v1552_v16  ;;  %v1553_v27 = vmul.f32 -1.442695, %v1342_v26 }
 0x704   :  { %v1299_v7 = vpop.f32.mrf.mxu0  ;;  %v1805_v54 = vpop.f32.mrf.mxu1 }
 0x705   :  { %1963 = vpow2.f32 %v1553_v27 }
 0x710   :  { %v1962_v15 = vpop.eup %1961 }
 0x711   :  { %v1349_v29 = vadd.f32 1.0, %v1962_v15 }
 0x712   :  { %v1964_v55 = vpop.eup %1963 }
 0x713   :  { %1965 = vrcp.f32 %v1349_v29  ;;  %v1350_v30 = vadd.f32 1.0, %v1964_v55 }
 0x715   :  { %1967 = vrcp.f32 %v1350_v30 }
 0x720   :  { %v1966_v33 = vpop.eup %1965 }
 0x721   :  { %v1356_v34 = vmul.f32 %v1966_v33, %v1355_v32 }
 0x722   :  { %v1968_v39 = vpop.eup %1967 }
 0x723   :  { %v1357_v38 = vadd.f32 %v1356_v34, %v2594_v36  ;;  %v1359_v40 = vsub.f32 1.0, %v1968_v39  ;;  %v1361_v44 = vmul.f32 %v1968_v39, %v2538_v19 }
 0x725   :  { %1969 = vtanh.f32 %v1357_v38 }
 0x732   :  { %v1970_v41 = vpop.eup %1969 }
 0x733   :  { %v1360_v42 = vmul.f32 %v1970_v41, %v1359_v40 }
 0x735   :  { %v1362_v45 = vadd.f32 %v1361_v44, %v1360_v42 }
 0x737   :  { %1554 = vst [vmem:[%s2580_s6 + $0x30] sm:$0xff] %v1362_v45  ;;  %v1369_v46 = vpack.c.bf16 %v1362_v45, %v1362_v45 }
 0x739   :  { %1403 = vmatmul.mubr.bf16.vlgmr.msra.gmra.mxu0 %v1369_v46  ;;  %1823 = vmatmul.mubr.bf16.vlgmr.msra.gmra.mxu1 %v1369_v46 }
 0x7f9   :  { %v1404_v47 = vpop.f32.mrf.mxu0  ;;  %v1445_v48 = vpop.f32.mrf.mxu1 }
 0x7fa   :  { %v1451_v50 = vadd.f32 %v1404_v47, %v2595_v49  ;;  %v1465_v13 = vadd.f32 %v2294_v63, %v1445_v48 }
 0x7fb   :  { %v1406_v57 = vpop.f32.mrf.mxu0  ;;  %v1824_v58 = vpop.f32.mrf.mxu1 }
 0x7fc   :  { %v1555_v61 = vmul.f32 -1.442695, %v1451_v50  ;;  %v1452_v59 = vadd.f32 %v1406_v57, %v2289_v31 }
 0x7fd   :  { %v1408_v8 = vpop.f32.mrf.mxu0  ;;  %v1448_v6 = vpop.f32.mrf.mxu1 }
 0x7fe   :  { %1971 = vpow2.f32 %v1555_v61  ;;  %v1556_v11 = vmul.f32 -1.442695, %v1452_v59 }
 0x7ff   :  { %v1409_v1 = vpop.f32.mrf.mxu0  ;;  %v1825_v19 = vpop.f32.mrf.mxu1 }
 0x800   :  { %1973 = vpow2.f32 %v1556_v11 }
 0x80b   :  { %v1972_v12 = vpop.eup %1971 }
 0x80c   :  { %v1459_v20 = vadd.f32 1.0, %v1972_v12 }
 0x80d   :  { %v1974_v25 = vpop.eup %1973 }
 0x80e   :  { %1975 = vrcp.f32 %v1459_v20  ;;  %v1460_v56 = vadd.f32 1.0, %v1974_v25 }
 0x810   :  { %1977 = vrcp.f32 %v1460_v56 }
 0x81b   :  { %v1976_v5 = vpop.eup %1975 }
 0x81c   :  { %v1466_v14 = vmul.f32 %v1976_v5, %v1465_v13 }
 0x81d   :  { %v1978_v60 = vpop.eup %1977 }
 0x81e   :  { %v1467_v51 = vadd.f32 %v1466_v14, %v2596_v18  ;;  %v1469_v0 = vsub.f32 1.0, %v1978_v60  ;;  %v1471_v31 = vmul.f32 %v1978_v60, %v1362_v45 }
 0x820   :  { %1979 = vtanh.f32 %v1467_v51 }
 0x82d   :  { %v1980_v62 = vpop.eup %1979 }
 0x82e   :  { %v1470_v35 = vmul.f32 %v1980_v62, %v1469_v0 }
 0x830   :  { %v1472_v3 = vadd.f32 %v1471_v31, %v1470_v35 }
 0x832   :  { %1557 = vst [vmem:[%s2580_s6 + $0x38] sm:$0xff] %v1472_v3 }
 0x833   :  { %1480 = vsyncpa [#allocation5], 1 }
 0x834   :  { %1481 = vsyncpa [#allocation7], 1 }

</bundles_post_ra>
